<compile_context>
chip_gen: v6e
topology: v6e:2x2x1
jax: 0.10.0
libtpu: 0.0.40
codegen_flags: <defaults>
</compile_context>

<pallas_src>
import math
from functools import partial

import jax
import jax.numpy as jnp
from jax.experimental import pallas as pl
from jax.experimental.pallas import tpu as pltpu

LN_EPS = 1e-12
_VMEM_LIMIT = 32 * 1024 * 1024

_CP_1D = pltpu.CompilerParams(
    dimension_semantics=("parallel",), vmem_limit_bytes=_VMEM_LIMIT)
_CP_2D = pltpu.CompilerParams(
    dimension_semantics=("parallel", "parallel"), vmem_limit_bytes=_VMEM_LIMIT)


# ---------------------------------------------------------------------------
# in-kernel helpers (f32 math)
# ---------------------------------------------------------------------------
def _bf16(x):
    return x.astype(jnp.bfloat16)


def _layernorm(x, gamma, beta):
    mu = jnp.mean(x, axis=-1, keepdims=True)
    xc = x - mu
    var = jnp.mean(xc * xc, axis=-1, keepdims=True)
    return xc * jax.lax.rsqrt(var + LN_EPS) * gamma + beta


def _gelu(x):
    c = math.sqrt(2.0 / math.pi)
    return 0.5 * x * (1.0 + jnp.tanh(c * (x + 0.044715 * x * x * x)))


# ---------------------------------------------------------------------------
# Kernels
# ---------------------------------------------------------------------------
def _embed_kernel(obs_ref, act_ref, wo_ref, bo_ref, wa_ref, ba_ref,
                  pe_ref, po_ref, g_ref, b_ref, out_ref):
    # obs projection + position/token-type add + LayerNorm  (even sequence slots)
    obs_e = jnp.dot(_bf16(obs_ref[0]), wo_ref[...],
                    preferred_element_type=jnp.float32) + bo_ref[...]
    act_e = jnp.dot(_bf16(act_ref[0]), wa_ref[...],
                    preferred_element_type=jnp.float32) + ba_ref[...]
    xo = _layernorm(obs_e + pe_ref[...], g_ref[...], b_ref[...])   # (T, H)
    xa = _layernorm(act_e + po_ref[...], g_ref[...], b_ref[...])   # (T, H)
    # (T, 2H); a contiguous reshape in the wrapper interleaves [o_t, a_t] along time.
    out_ref[0] = jnp.concatenate([xo, xa], axis=-1)


def _qkv_attention_kernel(h_ref, w_ref, b_ref, o_ref, *, head_dim, scale):
    # fused QKV projection (one matmul vs. concatenated per-head weight) + attention
    qkv = jnp.dot(_bf16(h_ref[0]), w_ref[0],
                  preferred_element_type=jnp.float32) + b_ref[0]    # (S, 3*dh)
    q = qkv[:, :head_dim]
    k = qkv[:, head_dim:2 * head_dim]
    v = qkv[:, 2 * head_dim:]
    # contract on last dims (no explicit k.T transpose)
    s = jax.lax.dot_general(
        _bf16(q), _bf16(k), (((1,), (1,)), ((), ())),
        preferred_element_type=jnp.float32) * scale                 # (S, S)
    m = jnp.max(s, axis=-1, keepdims=True)
    p = jnp.exp(s - m)
    denom = jnp.sum(p, axis=-1, keepdims=True)
    p = p * pl.reciprocal(denom, approx=True)                       # EUP, not VPU divide
    o_ref[0, 0] = jnp.dot(_bf16(p), _bf16(v),
                          preferred_element_type=jnp.float32)       # (S, dh)


def _attn_out_ln_kernel(ctx_ref, wo_ref, bo_ref, res_ref, g_ref, bln_ref, o_ref,
                        *, n_heads):
    # attention output projection (per-head accumulation = head merge) + residual + LN
    acc = bo_ref[...] + res_ref[0]                                  # (S, H) f32
    for i in range(n_heads):                                        # static unrolled loop
        acc = acc + jnp.dot(_bf16(ctx_ref[0, i]), wo_ref[i],
                            preferred_element_type=jnp.float32)
    o_ref[0] = _layernorm(acc, g_ref[...], bln_ref[...])


def _ffn_ln_kernel(h_ref, w1_ref, b1_ref, w2_ref, b2_ref, g_ref, bln_ref, o_ref):
    # dense + GELU + dense + residual + LayerNorm, fully fused
    h = h_ref[0]                                                    # (S, H) f32
    y = _gelu(jnp.dot(_bf16(h), w1_ref[...],
                      preferred_element_type=jnp.float32) + b1_ref[...])
    z = jnp.dot(_bf16(y), w2_ref[...],
                preferred_element_type=jnp.float32) + b2_ref[...] + h
    o_ref[0] = _layernorm(z, g_ref[...], bln_ref[...])


def _heads_kernel(h_ref, w_ref, b_ref, o_ref):
    # all three prediction heads as a single lane-padded matmul
    o_ref[0] = jnp.dot(_bf16(h_ref[0]), w_ref[...],
                       preferred_element_type=jnp.float32) + b_ref[...]


# ---------------------------------------------------------------------------
# pallas_call wrappers
# ---------------------------------------------------------------------------
def embed_sequence(obs, act, params):
    B, T, Do = obs.shape
    Da = act.shape[-1]
    wo, bo = params["obs_proj"]
    wa, ba = params["act_proj"]
    H = wo.shape[1]
    S = 2 * T
    pos = params["pos_emb"][:S] + params["tok_emb"][0]              # (S, H)
    pos_even = pos[0::2]                                            # positions of obs tokens
    pos_odd = pos[1::2]                                             # positions of act tokens
    gamma, beta = params["emb_ln"]
    out = pl.pallas_call(
        _embed_kernel,
        out_shape=jax.ShapeDtypeStruct((B, T, 2 * H), jnp.float32),
        grid=(B,),
        in_specs=[
            pl.BlockSpec((1, T, Do), lambda b: (b, 0, 0)),
            pl.BlockSpec((1, T, Da), lambda b: (b, 0, 0)),
            pl.BlockSpec((Do, H), lambda b: (0, 0)),
            pl.BlockSpec((1, H), lambda b: (0, 0)),
            pl.BlockSpec((Da, H), lambda b: (0, 0)),
            pl.BlockSpec((1, H), lambda b: (0, 0)),
            pl.BlockSpec((T, H), lambda b: (0, 0)),
            pl.BlockSpec((T, H), lambda b: (0, 0)),
            pl.BlockSpec((1, H), lambda b: (0, 0)),
            pl.BlockSpec((1, H), lambda b: (0, 0)),
        ],
        out_specs=pl.BlockSpec((1, T, 2 * H), lambda b: (b, 0, 0)),
        compiler_params=_CP_1D,
    )(obs, act, wo, bo, wa, ba, pos_even, pos_odd, gamma, beta)
    # contiguous reshape -> interleaved [o_1, a_1, o_2, a_2, ...] sequence, (B, S, H)
    return out.reshape(B, S, H)


def qkv_attention(h, w_qkv, b_qkv):
    """h: (B, S, H); w_qkv: (nh, H, 3*dh) bf16; b_qkv: (nh, 1, 3*dh) -> ctx (B, nh, S, dh)."""
    B, S, H = h.shape
    nh, _, d3 = w_qkv.shape
    dh = d3 // 3
    return pl.pallas_call(
        partial(_qkv_attention_kernel, head_dim=dh, scale=1.0 / math.sqrt(dh)),
        out_shape=jax.ShapeDtypeStruct((B, nh, S, dh), jnp.float32),
        grid=(B, nh),
        in_specs=[
            pl.BlockSpec((1, S, H), lambda b, hd: (b, 0, 0)),
            pl.BlockSpec((1, H, d3), lambda b, hd: (hd, 0, 0)),
            pl.BlockSpec((1, 1, d3), lambda b, hd: (hd, 0, 0)),
        ],
        out_specs=pl.BlockSpec((1, 1, S, dh), lambda b, hd: (b, hd, 0, 0)),
        compiler_params=_CP_2D,
    )(h, w_qkv, b_qkv)


def attn_out_layernorm(ctx, w_o, b_o, residual, gamma, beta):
    """ctx: (B, nh, S, dh); w_o: (nh, dh, H) bf16 -> LayerNorm(ctx @ Wo + b + residual)."""
    B, nh, S, dh = ctx.shape
    H = w_o.shape[-1]
    return pl.pallas_call(
        partial(_attn_out_ln_kernel, n_heads=nh),
        out_shape=jax.ShapeDtypeStruct((B, S, H), jnp.float32),
        grid=(B,),
        in_specs=[
            pl.BlockSpec((1, nh, S, dh), lambda b: (b, 0, 0, 0)),
            pl.BlockSpec((nh, dh, H), lambda b: (0, 0, 0)),
            pl.BlockSpec((1, H), lambda b: (0, 0)),
            pl.BlockSpec((1, S, H), lambda b: (b, 0, 0)),
            pl.BlockSpec((1, H), lambda b: (0, 0)),
            pl.BlockSpec((1, H), lambda b: (0, 0)),
        ],
        out_specs=pl.BlockSpec((1, S, H), lambda b: (b, 0, 0)),
        compiler_params=_CP_1D,
    )(ctx, w_o, b_o, residual, gamma, beta)


def ffn_layernorm(h, w1, b1, w2, b2, gamma, beta):
    B, S, H = h.shape
    I = w1.shape[1]
    return pl.pallas_call(
        _ffn_ln_kernel,
        out_shape=jax.ShapeDtypeStruct((B, S, H), jnp.float32),
        grid=(B,),
        in_specs=[
            pl.BlockSpec((1, S, H), lambda b: (b, 0, 0)),
            pl.BlockSpec((H, I), lambda b: (0, 0)),
            pl.BlockSpec((1, I), lambda b: (0, 0)),
            pl.BlockSpec((I, H), lambda b: (0, 0)),
            pl.BlockSpec((1, H), lambda b: (0, 0)),
            pl.BlockSpec((1, H), lambda b: (0, 0)),
            pl.BlockSpec((1, H), lambda b: (0, 0)),
        ],
        out_specs=pl.BlockSpec((1, S, H), lambda b: (b, 0, 0)),
        compiler_params=_CP_1D,
    )(h, w1, b1, w2, b2, gamma, beta)


def output_heads(h, w, b):
    """h: (B, S, H); w: (H, Dpad) bf16 (three heads concatenated, zero-padded to 128 lanes)."""
    B, S, H = h.shape
    Dpad = w.shape[1]
    return pl.pallas_call(
        _heads_kernel,
        out_shape=jax.ShapeDtypeStruct((B, S, Dpad), jnp.float32),
        grid=(B,),
        in_specs=[
            pl.BlockSpec((1, S, H), lambda b: (b, 0, 0)),
            pl.BlockSpec((H, Dpad), lambda b: (0, 0)),
            pl.BlockSpec((1, Dpad), lambda b: (0, 0)),
        ],
        out_specs=pl.BlockSpec((1, S, Dpad), lambda b: (b, 0, 0)),
        compiler_params=_CP_1D,
    )(h, w, b)


# ---------------------------------------------------------------------------
# Parameter initialization (deterministic, synthetic; only arrays in the pytree)
# ---------------------------------------------------------------------------
def init_params(key, *, obs_dim, act_dim, hidden, n_layers, n_heads,
                intermediate, max_pos):
    assert hidden % n_heads == 0
    head_dim = hidden // n_heads
    keys = iter(jax.random.split(key, 8 + 8 * n_layers))

    def dense(din, dout, dtype=jnp.bfloat16):
        w = jax.random.normal(next(keys), (din, dout), jnp.float32) * 0.02
        return w.astype(dtype), jnp.zeros((1, dout), jnp.float32)

    def ones_zeros(d):
        return jnp.ones((1, d), jnp.float32), jnp.zeros((1, d), jnp.float32)

    p = {}
    # TODO(synk): original `_embed_sequence` body is `pass`; using linear projections of
    # obs/actions interleaved along time as the embedding.
    p["obs_proj"] = dense(obs_dim, hidden)
    p["act_proj"] = dense(act_dim, hidden)
    p["pos_emb"] = jax.random.normal(next(keys), (max_pos, hidden), jnp.float32) * 0.02
    p["tok_emb"] = jax.random.normal(next(keys), (2, hidden), jnp.float32) * 0.02
    p["emb_ln"] = ones_zeros(hidden)

    def per_head_cols(w):   # (H, H) -> (n_heads, H, head_dim)
        return w.reshape(hidden, n_heads, head_dim).transpose(1, 0, 2)

    layers = []
    for _ in range(n_layers):
        wq, _ = dense(hidden, hidden, jnp.float32)
        wk, _ = dense(hidden, hidden, jnp.float32)
        wv, _ = dense(hidden, hidden, jnp.float32)
        # per-head fused QKV weight so the attention kernel never needs an XLA head split.
        w_qkv = jnp.concatenate(
            [per_head_cols(wq), per_head_cols(wk), per_head_cols(wv)],
            axis=-1).astype(jnp.bfloat16)                            # (nh, H, 3*dh)
        b_qkv = jnp.zeros((n_heads, 1, 3 * head_dim), jnp.float32)
        wo, bo = dense(hidden, hidden, jnp.float32)
        w_o = wo.reshape(n_heads, head_dim, hidden).astype(jnp.bfloat16)  # (nh, dh, H)
        layers.append(dict(
            w_qkv=w_qkv, b_qkv=b_qkv, w_o=w_o, b_o=bo,
            ln1=ones_zeros(hidden),
            ffn_in=dense(hidden, intermediate),
            ffn_out=dense(intermediate, hidden),
            ln2=ones_zeros(hidden),
        ))
    p["layers"] = layers

    # Three output heads fused into one matmul, zero-padded to a lane-dense 128-wide slab.
    wf, _ = dense(hidden, obs_dim, jnp.float32)
    wi, _ = dense(hidden, act_dim, jnp.float32)
    wh, _ = dense(hidden, act_dim, jnp.float32)
    w_heads = jnp.concatenate([wf, wi, wh], axis=-1)                 # (H, Do + 2*Da)
    dtot = w_heads.shape[1]
    dpad = ((dtot + 127) // 128) * 128
    w_heads = jnp.pad(w_heads, ((0, 0), (0, dpad - dtot))).astype(jnp.bfloat16)
    p["heads_w"] = w_heads                                           # (H, dpad) bf16
    p["heads_b"] = jnp.zeros((1, dpad), jnp.float32)
    return p


# ---------------------------------------------------------------------------
# ControlTransformer forward
# ---------------------------------------------------------------------------
def control_transformer_forward(params, observations, actions):
    B, T, obs_dim = observations.shape
    act_dim = actions.shape[-1]

    # _embed_sequence + BERT embeddings (pos/token-type add + LayerNorm), one fused kernel.
    h = embed_sequence(observations, actions, params)                # (B, S, H) f32

    # BERT encoder (post-LN), 3 fused kernels per layer.
    for lp in params["layers"]:
        ctx = qkv_attention(h, lp["w_qkv"], lp["b_qkv"])             # (B, nh, S, dh)
        h = attn_out_layernorm(ctx, lp["w_o"], lp["b_o"], h, *lp["ln1"])
        h = ffn_layernorm(h, *lp["ffn_in"], *lp["ffn_out"], *lp["ln2"])

    # Fused output heads (single lane-padded matmul), split in the wrapper.
    out = output_heads(h, params["heads_w"], params["heads_b"])      # (B, S, Dpad)
    fwd = out[..., :obs_dim]
    inv = out[..., obs_dim:obs_dim + act_dim]
    hind = out[..., obs_dim + act_dim:obs_dim + 2 * act_dim]
    return fwd, inv, hind


# ---------------------------------------------------------------------------
if __name__ == "__main__":
    B, T = 2, 4
    OBS_DIM, ACT_DIM = 8, 4
    HIDDEN, N_HEADS, N_LAYERS, INTERMEDIATE = 32, 4, 2, 64
    MAX_POS = 16

    key = jax.random.PRNGKey(0)
    k_params, k_obs, k_act = jax.random.split(key, 3)

    params = init_params(
        k_params, obs_dim=OBS_DIM, act_dim=ACT_DIM, hidden=HIDDEN,
        n_layers=N_LAYERS, n_heads=N_HEADS, intermediate=INTERMEDIATE,
        max_pos=MAX_POS,
    )

    observations = jax.random.normal(k_obs, (B, T, OBS_DIM), jnp.float32)
    actions = jax.random.normal(k_act, (B, T, ACT_DIM), jnp.float32)

    fwd, inv, hind = jax.jit(control_transformer_forward)(params, observations, actions)
    jax.block_until_ready((fwd, inv, hind))

    assert fwd.shape == (B, 2 * T, OBS_DIM)
    assert inv.shape == (B, 2 * T, ACT_DIM)
    assert hind.shape == (B, 2 * T, ACT_DIM)
    assert bool(jnp.all(jnp.isfinite(fwd))
                & jnp.all(jnp.isfinite(inv))
                & jnp.all(jnp.isfinite(hind)))
    print("KERNEL_OK")
</pallas_src>

<mosaic_0001>
module attributes {stable_mosaic.version = 11 : i64} {
  func.func @_qkv_attention_kernel(%arg0: i32, %arg1: i32, %arg2: memref<1x8x32xf32, #tpu.memory_space<vmem>>, %arg3: memref<1x32x24xbf16, #tpu.memory_space<vmem>>, %arg4: memref<1x1x24xf32, #tpu.memory_space<vmem>>, %arg5: memref<1x1x8x8xf32, #tpu.memory_space<vmem>>) attributes {dimension_semantics = [#tpu.dimension_semantics<parallel>, #tpu.dimension_semantics<parallel>], iteration_bounds = array<i64: 2, 4>, scalar_prefetch = 0 : i64, scratch_operands = 0 : i64, tpu.core_type = #tpu.core_type<tc>, window_params = [{transform_indices = @transform_0, window_bounds = array<i64: 1, 8, 32>}, {transform_indices = @transform_1, window_bounds = array<i64: 1, 32, 24>}, {transform_indices = @transform_2, window_bounds = array<i64: 1, 1, 24>}, {transform_indices = @transform_3, window_bounds = array<i64: 1, 1, 8, 8>}]} {
    %c0 = arith.constant 0 : index
    %c0_0 = arith.constant 0 : index
    %c0_1 = arith.constant 0 : index
    %0 = vector.load %arg2[%c0, %c0_0, %c0_1] : memref<1x8x32xf32, #tpu.memory_space<vmem>>, vector<1x8x32xf32>
    %1 = vector.shape_cast %0 : vector<1x8x32xf32> to vector<8x32xf32>
    %2 = arith.truncf %1 : vector<8x32xf32> to vector<8x32xbf16>
    %c0_2 = arith.constant 0 : index
    %c0_3 = arith.constant 0 : index
    %c0_4 = arith.constant 0 : index
    %3 = vector.load %arg3[%c0_2, %c0_3, %c0_4] : memref<1x32x24xbf16, #tpu.memory_space<vmem>>, vector<1x32x24xbf16>
    %4 = vector.shape_cast %3 : vector<1x32x24xbf16> to vector<32x24xbf16>
    %cst = arith.constant dense<0.000000e+00> : vector<8x24xf32>
    %5 = tpu.matmul %2, %4, %cst {dimension_numbers = #tpu.dot_dimension_numbers<[1], [0], [0], [1], [0, 0, 1, 1], [], []>} : vector<8x32xbf16>, vector<32x24xbf16>, vector<8x24xf32> -> vector<8x24xf32>
    %c0_5 = arith.constant 0 : index
    %c0_6 = arith.constant 0 : index
    %c0_7 = arith.constant 0 : index
    %6 = vector.load %arg4[%c0_5, %c0_6, %c0_7] : memref<1x1x24xf32, #tpu.memory_space<vmem>>, vector<1x1x24xf32>
    %7 = vector.shape_cast %6 : vector<1x1x24xf32> to vector<1x24xf32>
    %8 = vector.broadcast %7 : vector<1x24xf32> to vector<8x24xf32>
    %9 = arith.addf %5, %8 : vector<8x24xf32>
    %10 = vector.extract_strided_slice %9 {offsets = [0, 0], sizes = [8, 8], strides = [1, 1]} : vector<8x24xf32> to vector<8x8xf32>
    %11 = vector.extract_strided_slice %9 {offsets = [0, 8], sizes = [8, 8], strides = [1, 1]} : vector<8x24xf32> to vector<8x8xf32>
    %12 = vector.extract_strided_slice %9 {offsets = [0, 16], sizes = [8, 8], strides = [1, 1]} : vector<8x24xf32> to vector<8x8xf32>
    %13 = arith.truncf %10 : vector<8x8xf32> to vector<8x8xbf16>
    %14 = arith.truncf %11 : vector<8x8xf32> to vector<8x8xbf16>
    %cst_8 = arith.constant dense<0.000000e+00> : vector<8x8xf32>
    %15 = tpu.matmul %13, %14, %cst_8 {dimension_numbers = #tpu.dot_dimension_numbers<[1], [1], [0], [0], [0, 0, 1, 0], [], []>} : vector<8x8xbf16>, vector<8x8xbf16>, vector<8x8xf32> -> vector<8x8xf32>
    %cst_9 = arith.constant 0.353553385 : f32
    %16 = vector.broadcast %cst_9 : f32 to vector<8x8xf32>
    %17 = arith.mulf %15, %16 : vector<8x8xf32>
    %cst_10 = arith.constant dense<0xFF800000> : vector<8xf32>
    %18 = vector.multi_reduction <maximumf>, %17, %cst_10 [1] : vector<8x8xf32> to vector<8xf32>
    %19 = vector.shape_cast %18 : vector<8xf32> to vector<8x1xf32>
    %20 = vector.broadcast %19 : vector<8x1xf32> to vector<8x8xf32>
    %21 = arith.subf %17, %20 : vector<8x8xf32>
    %22 = math.exp %21 : vector<8x8xf32>
    %cst_11 = arith.constant dense<0.000000e+00> : vector<8xf32>
    %23 = vector.multi_reduction <add>, %22, %cst_11 [1] : vector<8x8xf32> to vector<8xf32>
    %24 = vector.shape_cast %23 : vector<8xf32> to vector<8x1xf32>
    %25 = tpu.reciprocal %24 {approx = true} : vector<8x1xf32> -> vector<8x1xf32>
    %26 = vector.broadcast %25 : vector<8x1xf32> to vector<8x8xf32>
    %27 = arith.mulf %22, %26 : vector<8x8xf32>
    %28 = arith.truncf %27 : vector<8x8xf32> to vector<8x8xbf16>
    %29 = arith.truncf %12 : vector<8x8xf32> to vector<8x8xbf16>
    %cst_12 = arith.constant dense<0.000000e+00> : vector<8x8xf32>
    %30 = tpu.matmul %28, %29, %cst_12 {dimension_numbers = #tpu.dot_dimension_numbers<[1], [0], [0], [1], [0, 0, 1, 1], [], []>} : vector<8x8xbf16>, vector<8x8xbf16>, vector<8x8xf32> -> vector<8x8xf32>
    %c0_13 = arith.constant 0 : index
    %c0_14 = arith.constant 0 : index
    %c0_15 = arith.constant 0 : index
    %c0_16 = arith.constant 0 : index
    %31 = vector.load %arg5[%c0_13, %c0_14, %c0_15, %c0_16] : memref<1x1x8x8xf32, #tpu.memory_space<vmem>>, vector<1x1x8x8xf32>
    %32 = vector.shape_cast %31 : vector<1x1x8x8xf32> to vector<8x8xf32>
    %33 = vector.shape_cast %30 : vector<8x8xf32> to vector<1x1x8x8xf32>
    tpu.vector_store %arg5[%c0_13, %c0_14, %c0_15, %c0_16], %33 {strides = array<i32>} : memref<1x1x8x8xf32, #tpu.memory_space<vmem>>, vector<1x1x8x8xf32>,
    return
  }
  func.func @transform_0(%arg0: i32, %arg1: i32) -> (i32, i32, i32) {
    %c0_i32 = arith.constant 0 : i32
    %c0_i32_0 = arith.constant 0 : i32
    %c0_i32_1 = arith.constant 0 : i32
    return %arg0, %c0_i32, %c0_i32_0 : i32, i32, i32
  }
  func.func @transform_1(%arg0: i32, %arg1: i32) -> (i32, i32, i32) {
    %c0_i32 = arith.constant 0 : i32
    %c0_i32_0 = arith.constant 0 : i32
    %c0_i32_1 = arith.constant 0 : i32
    return %arg1, %c0_i32, %c0_i32_0 : i32, i32, i32
  }
  func.func @transform_2(%arg0: i32, %arg1: i32) -> (i32, i32, i32) {
    %c0_i32 = arith.constant 0 : i32
    %c0_i32_0 = arith.constant 0 : i32
    %c0_i32_1 = arith.constant 0 : i32
    return %arg1, %c0_i32, %c0_i32_0 : i32, i32, i32
  }
  func.func @transform_3(%arg0: i32, %arg1: i32) -> (i32, i32, i32, i32) {
    %c0_i32 = arith.constant 0 : i32
    %c0_i32_0 = arith.constant 0 : i32
    %c0_i32_1 = arith.constant 0 : i32
    return %arg0, %arg1, %c0_i32, %c0_i32_0 : i32, i32, i32, i32
  }
}

module attributes {stable_mosaic.version = 11 : i64} {
  func.func @_embed_kernel(%arg0: i32, %arg1: memref<1x4x8xf32, #tpu.memory_space<vmem>>, %arg2: memref<1x4x4xf32, #tpu.memory_space<vmem>>, %arg3: memref<8x32xbf16, #tpu.memory_space<vmem>>, %arg4: memref<1x32xf32, #tpu.memory_space<vmem>>, %arg5: memref<4x32xbf16, #tpu.memory_space<vmem>>, %arg6: memref<1x32xf32, #tpu.memory_space<vmem>>, %arg7: memref<4x32xf32, #tpu.memory_space<vmem>>, %arg8: memref<4x32xf32, #tpu.memory_space<vmem>>, %arg9: memref<1x32xf32, #tpu.memory_space<vmem>>, %arg10: memref<1x32xf32, #tpu.memory_space<vmem>>, %arg11: memref<1x4x64xf32, #tpu.memory_space<vmem>>) attributes {dimension_semantics = [#tpu.dimension_semantics<parallel>], iteration_bounds = array<i64: 2>, scalar_prefetch = 0 : i64, scratch_operands = 0 : i64, tpu.core_type = #tpu.core_type<tc>, window_params = [{transform_indices = @transform_0, window_bounds = array<i64: 1, 4, 8>}, {transform_indices = @transform_1, window_bounds = array<i64: 1, 4, 4>}, {pipeline_mode = #tpu.pipeline_mode<synchronous>, transform_indices = @transform_2, window_bounds = array<i64: 8, 32>}, {pipeline_mode = #tpu.pipeline_mode<synchronous>, transform_indices = @transform_3, window_bounds = array<i64: 1, 32>}, {pipeline_mode = #tpu.pipeline_mode<synchronous>, transform_indices = @transform_4, window_bounds = array<i64: 4, 32>}, {pipeline_mode = #tpu.pipeline_mode<synchronous>, transform_indices = @transform_5, window_bounds = array<i64: 1, 32>}, {pipeline_mode = #tpu.pipeline_mode<synchronous>, transform_indices = @transform_6, window_bounds = array<i64: 4, 32>}, {pipeline_mode = #tpu.pipeline_mode<synchronous>, transform_indices = @transform_7, window_bounds = array<i64: 4, 32>}, {pipeline_mode = #tpu.pipeline_mode<synchronous>, transform_indices = @transform_8, window_bounds = array<i64: 1, 32>}, {pipeline_mode = #tpu.pipeline_mode<synchronous>, transform_indices = @transform_9, window_bounds = array<i64: 1, 32>}, {transform_indices = @transform_10, window_bounds = array<i64: 1, 4, 64>}]} {
    %c0 = arith.constant 0 : index
    %c0_0 = arith.constant 0 : index
    %c0_1 = arith.constant 0 : index
    %0 = vector.load %arg1[%c0, %c0_0, %c0_1] : memref<1x4x8xf32, #tpu.memory_space<vmem>>, vector<1x4x8xf32>
    %1 = vector.shape_cast %0 : vector<1x4x8xf32> to vector<4x8xf32>
    %2 = arith.truncf %1 : vector<4x8xf32> to vector<4x8xbf16>
    %c0_2 = arith.constant 0 : index
    %c0_3 = arith.constant 0 : index
    %3 = vector.load %arg3[%c0_2, %c0_3] : memref<8x32xbf16, #tpu.memory_space<vmem>>, vector<8x32xbf16>
    %cst = arith.constant dense<0.000000e+00> : vector<4x32xf32>
    %4 = tpu.matmul %2, %3, %cst {dimension_numbers = #tpu.dot_dimension_numbers<[1], [0], [0], [1], [0, 0, 1, 1], [], []>} : vector<4x8xbf16>, vector<8x32xbf16>, vector<4x32xf32> -> vector<4x32xf32>
    %c0_4 = arith.constant 0 : index
    %c0_5 = arith.constant 0 : index
    %5 = vector.load %arg4[%c0_4, %c0_5] : memref<1x32xf32, #tpu.memory_space<vmem>>, vector<1x32xf32>
    %6 = vector.broadcast %5 : vector<1x32xf32> to vector<4x32xf32>
    %7 = arith.addf %4, %6 : vector<4x32xf32>
    %c0_6 = arith.constant 0 : index
    %c0_7 = arith.constant 0 : index
    %c0_8 = arith.constant 0 : index
    %8 = vector.load %arg2[%c0_6, %c0_7, %c0_8] : memref<1x4x4xf32, #tpu.memory_space<vmem>>, vector<1x4x4xf32>
    %9 = vector.shape_cast %8 : vector<1x4x4xf32> to vector<4x4xf32>
    %10 = arith.truncf %9 : vector<4x4xf32> to vector<4x4xbf16>
    %c0_9 = arith.constant 0 : index
    %c0_10 = arith.constant 0 : index
    %11 = vector.load %arg5[%c0_9, %c0_10] : memref<4x32xbf16, #tpu.memory_space<vmem>>, vector<4x32xbf16>
    %cst_11 = arith.constant dense<0.000000e+00> : vector<4x32xf32>
    %12 = tpu.matmul %10, %11, %cst_11 {dimension_numbers = #tpu.dot_dimension_numbers<[1], [0], [0], [1], [0, 0, 1, 1], [], []>} : vector<4x4xbf16>, vector<4x32xbf16>, vector<4x32xf32> -> vector<4x32xf32>
    %c0_12 = arith.constant 0 : index
    %c0_13 = arith.constant 0 : index
    %13 = vector.load %arg6[%c0_12, %c0_13] : memref<1x32xf32, #tpu.memory_space<vmem>>, vector<1x32xf32>
    %14 = vector.broadcast %13 : vector<1x32xf32> to vector<4x32xf32>
    %15 = arith.addf %12, %14 : vector<4x32xf32>
    %c0_14 = arith.constant 0 : index
    %c0_15 = arith.constant 0 : index
    %16 = vector.load %arg7[%c0_14, %c0_15] : memref<4x32xf32, #tpu.memory_space<vmem>>, vector<4x32xf32>
    %17 = arith.addf %7, %16 : vector<4x32xf32>
    %c0_16 = arith.constant 0 : index
    %c0_17 = arith.constant 0 : index
    %18 = vector.load %arg9[%c0_16, %c0_17] : memref<1x32xf32, #tpu.memory_space<vmem>>, vector<1x32xf32>
    %c0_18 = arith.constant 0 : index
    %c0_19 = arith.constant 0 : index
    %19 = vector.load %arg10[%c0_18, %c0_19] : memref<1x32xf32, #tpu.memory_space<vmem>>, vector<1x32xf32>
    %cst_20 = arith.constant dense<0.000000e+00> : vector<4xf32>
    %20 = vector.multi_reduction <add>, %17, %cst_20 [1] : vector<4x32xf32> to vector<4xf32>
    %21 = vector.shape_cast %20 : vector<4xf32> to vector<4x1xf32>
    %cst_21 = arith.constant 3.200000e+01 : f32
    %22 = vector.broadcast %cst_21 : f32 to vector<4x1xf32>
    %23 = arith.divf %21, %22 : vector<4x1xf32>
    %24 = vector.broadcast %23 : vector<4x1xf32> to vector<4x32xf32>
    %25 = arith.subf %17, %24 : vector<4x32xf32>
    %26 = arith.mulf %25, %25 : vector<4x32xf32>
    %cst_22 = arith.constant dense<0.000000e+00> : vector<4xf32>
    %27 = vector.multi_reduction <add>, %26, %cst_22 [1] : vector<4x32xf32> to vector<4xf32>
    %28 = vector.shape_cast %27 : vector<4xf32> to vector<4x1xf32>
    %cst_23 = arith.constant 3.200000e+01 : f32
    %29 = vector.broadcast %cst_23 : f32 to vector<4x1xf32>
    %30 = arith.divf %28, %29 : vector<4x1xf32>
    %cst_24 = arith.constant 9.99999996E-13 : f32
    %31 = vector.broadcast %cst_24 : f32 to vector<4x1xf32>
    %32 = arith.addf %30, %31 : vector<4x1xf32>
    %33 = math.rsqrt %32 : vector<4x1xf32>
    %34 = vector.broadcast %33 : vector<4x1xf32> to vector<4x32xf32>
    %35 = arith.mulf %25, %34 : vector<4x32xf32>
    %36 = vector.broadcast %18 : vector<1x32xf32> to vector<4x32xf32>
    %37 = arith.mulf %35, %36 : vector<4x32xf32>
    %38 = vector.broadcast %19 : vector<1x32xf32> to vector<4x32xf32>
    %39 = arith.addf %37, %38 : vector<4x32xf32>
    %c0_25 = arith.constant 0 : index
    %c0_26 = arith.constant 0 : index
    %40 = vector.load %arg8[%c0_25, %c0_26] : memref<4x32xf32, #tpu.memory_space<vmem>>, vector<4x32xf32>
    %41 = arith.addf %15, %40 : vector<4x32xf32>
    %c0_27 = arith.constant 0 : index
    %c0_28 = arith.constant 0 : index
    %42 = vector.load %arg9[%c0_27, %c0_28] : memref<1x32xf32, #tpu.memory_space<vmem>>, vector<1x32xf32>
    %c0_29 = arith.constant 0 : index
    %c0_30 = arith.constant 0 : index
    %43 = vector.load %arg10[%c0_29, %c0_30] : memref<1x32xf32, #tpu.memory_space<vmem>>, vector<1x32xf32>
    %cst_31 = arith.constant dense<0.000000e+00> : vector<4xf32>
    %44 = vector.multi_reduction <add>, %41, %cst_31 [1] : vector<4x32xf32> to vector<4xf32>
    %45 = vector.shape_cast %44 : vector<4xf32> to vector<4x1xf32>
    %cst_32 = arith.constant 3.200000e+01 : f32
    %46 = vector.broadcast %cst_32 : f32 to vector<4x1xf32>
    %47 = arith.divf %45, %46 : vector<4x1xf32>
    %48 = vector.broadcast %47 : vector<4x1xf32> to vector<4x32xf32>
    %49 = arith.subf %41, %48 : vector<4x32xf32>
    %50 = arith.mulf %49, %49 : vector<4x32xf32>
    %cst_33 = arith.constant dense<0.000000e+00> : vector<4xf32>
    %51 = vector.multi_reduction <add>, %50, %cst_33 [1] : vector<4x32xf32> to vector<4xf32>
    %52 = vector.shape_cast %51 : vector<4xf32> to vector<4x1xf32>
    %cst_34 = arith.constant 3.200000e+01 : f32
    %53 = vector.broadcast %cst_34 : f32 to vector<4x1xf32>
    %54 = arith.divf %52, %53 : vector<4x1xf32>
    %cst_35 = arith.constant 9.99999996E-13 : f32
    %55 = vector.broadcast %cst_35 : f32 to vector<4x1xf32>
    %56 = arith.addf %54, %55 : vector<4x1xf32>
    %57 = math.rsqrt %56 : vector<4x1xf32>
    %58 = vector.broadcast %57 : vector<4x1xf32> to vector<4x32xf32>
    %59 = arith.mulf %49, %58 : vector<4x32xf32>
    %60 = vector.broadcast %42 : vector<1x32xf32> to vector<4x32xf32>
    %61 = arith.mulf %59, %60 : vector<4x32xf32>
    %62 = vector.broadcast %43 : vector<1x32xf32> to vector<4x32xf32>
    %63 = arith.addf %61, %62 : vector<4x32xf32>
    %64 = tpu.concatenate %39, %63 in 1 : vector<4x32xf32>, vector<4x32xf32> -> vector<4x64xf32>
    %c0_36 = arith.constant 0 : index
    %c0_37 = arith.constant 0 : index
    %c0_38 = arith.constant 0 : index
    %65 = vector.load %arg11[%c0_36, %c0_37, %c0_38] : memref<1x4x64xf32, #tpu.memory_space<vmem>>, vector<1x4x64xf32>
    %66 = vector.shape_cast %65 : vector<1x4x64xf32> to vector<4x64xf32>
    %67 = vector.shape_cast %64 : vector<4x64xf32> to vector<1x4x64xf32>
    tpu.vector_store %arg11[%c0_36, %c0_37, %c0_38], %67 {strides = array<i32>} : memref<1x4x64xf32, #tpu.memory_space<vmem>>, vector<1x4x64xf32>,
    return
  }
  func.func @transform_0(%arg0: i32) -> (i32, i32, i32) {
    %c0_i32 = arith.constant 0 : i32
    %c0_i32_0 = arith.constant 0 : i32
    %c0_i32_1 = arith.constant 0 : i32
    return %arg0, %c0_i32, %c0_i32_0 : i32, i32, i32
  }
  func.func @transform_1(%arg0: i32) -> (i32, i32, i32) {
    %c0_i32 = arith.constant 0 : i32
    %c0_i32_0 = arith.constant 0 : i32
    %c0_i32_1 = arith.constant 0 : i32
    return %arg0, %c0_i32, %c0_i32_0 : i32, i32, i32
  }
  func.func @transform_2(%arg0: i32) -> (i32, i32) {
    %c0_i32 = arith.constant 0 : i32
    %c0_i32_0 = arith.constant 0 : i32
    %c0_i32_1 = arith.constant 0 : i32
    return %c0_i32, %c0_i32_0 : i32, i32
  }
  func.func @transform_3(%arg0: i32) -> (i32, i32) {
    %c0_i32 = arith.constant 0 : i32
    %c0_i32_0 = arith.constant 0 : i32
    %c0_i32_1 = arith.constant 0 : i32
    return %c0_i32, %c0_i32_0 : i32, i32
  }
  func.func @transform_4(%arg0: i32) -> (i32, i32) {
    %c0_i32 = arith.constant 0 : i32
    %c0_i32_0 = arith.constant 0 : i32
    %c0_i32_1 = arith.constant 0 : i32
    return %c0_i32, %c0_i32_0 : i32, i32
  }
  func.func @transform_5(%arg0: i32) -> (i32, i32) {
    %c0_i32 = arith.constant 0 : i32
    %c0_i32_0 = arith.constant 0 : i32
    %c0_i32_1 = arith.constant 0 : i32
    return %c0_i32, %c0_i32_0 : i32, i32
  }
  func.func @transform_6(%arg0: i32) -> (i32, i32) {
    %c0_i32 = arith.constant 0 : i32
    %c0_i32_0 = arith.constant 0 : i32
    %c0_i32_1 = arith.constant 0 : i32
    return %c0_i32, %c0_i32_0 : i32, i32
  }
  func.func @transform_7(%arg0: i32) -> (i32, i32) {
    %c0_i32 = arith.constant 0 : i32
    %c0_i32_0 = arith.constant 0 : i32
    %c0_i32_1 = arith.constant 0 : i32
    return %c0_i32, %c0_i32_0 : i32, i32
  }
  func.func @transform_8(%arg0: i32) -> (i32, i32) {
    %c0_i32 = arith.constant 0 : i32
    %c0_i32_0 = arith.constant 0 : i32
    %c0_i32_1 = arith.constant 0 : i32
    return %c0_i32, %c0_i32_0 : i32, i32
  }
  func.func @transform_9(%arg0: i32) -> (i32, i32) {
    %c0_i32 = arith.constant 0 : i32
    %c0_i32_0 = arith.constant 0 : i32
    %c0_i32_1 = arith.constant 0 : i32
    return %c0_i32, %c0_i32_0 : i32, i32
  }
  func.func @transform_10(%arg0: i32) -> (i32, i32, i32) {
    %c0_i32 = arith.constant 0 : i32
    %c0_i32_0 = arith.constant 0 : i32
    %c0_i32_1 = arith.constant 0 : i32
    return %arg0, %c0_i32, %c0_i32_0 : i32, i32, i32
  }
}

module attributes {stable_mosaic.version = 11 : i64} {
  func.func @_attn_out_ln_kernel(%arg0: i32, %arg1: memref<1x4x8x8xf32, #tpu.memory_space<vmem>>, %arg2: memref<4x8x32xbf16, #tpu.memory_space<vmem>>, %arg3: memref<1x32xf32, #tpu.memory_space<vmem>>, %arg4: memref<1x8x32xf32, #tpu.memory_space<vmem>>, %arg5: memref<1x32xf32, #tpu.memory_space<vmem>>, %arg6: memref<1x32xf32, #tpu.memory_space<vmem>>, %arg7: memref<1x8x32xf32, #tpu.memory_space<vmem>>) attributes {dimension_semantics = [#tpu.dimension_semantics<parallel>], iteration_bounds = array<i64: 2>, scalar_prefetch = 0 : i64, scratch_operands = 0 : i64, tpu.core_type = #tpu.core_type<tc>, window_params = [{transform_indices = @transform_0, window_bounds = array<i64: 1, 4, 8, 8>}, {pipeline_mode = #tpu.pipeline_mode<synchronous>, transform_indices = @transform_1, window_bounds = array<i64: 4, 8, 32>}, {pipeline_mode = #tpu.pipeline_mode<synchronous>, transform_indices = @transform_2, window_bounds = array<i64: 1, 32>}, {transform_indices = @transform_3, window_bounds = array<i64: 1, 8, 32>}, {pipeline_mode = #tpu.pipeline_mode<synchronous>, transform_indices = @transform_4, window_bounds = array<i64: 1, 32>}, {pipeline_mode = #tpu.pipeline_mode<synchronous>, transform_indices = @transform_5, window_bounds = array<i64: 1, 32>}, {transform_indices = @transform_6, window_bounds = array<i64: 1, 8, 32>}]} {
    %c0 = arith.constant 0 : index
    %c0_0 = arith.constant 0 : index
    %0 = vector.load %arg3[%c0, %c0_0] : memref<1x32xf32, #tpu.memory_space<vmem>>, vector<1x32xf32>
    %c0_1 = arith.constant 0 : index
    %c0_2 = arith.constant 0 : index
    %c0_3 = arith.constant 0 : index
    %1 = vector.load %arg4[%c0_1, %c0_2, %c0_3] : memref<1x8x32xf32, #tpu.memory_space<vmem>>, vector<1x8x32xf32>
    %2 = vector.shape_cast %1 : vector<1x8x32xf32> to vector<8x32xf32>
    %3 = vector.broadcast %0 : vector<1x32xf32> to vector<8x32xf32>
    %4 = arith.addf %3, %2 : vector<8x32xf32>
    %c0_4 = arith.constant 0 : index
    %c0_5 = arith.constant 0 : index
    %c0_6 = arith.constant 0 : index
    %c0_7 = arith.constant 0 : index
    %5 = vector.load %arg1[%c0_4, %c0_5, %c0_6, %c0_7] : memref<1x4x8x8xf32, #tpu.memory_space<vmem>>, vector<1x1x8x8xf32>
    %6 = vector.shape_cast %5 : vector<1x1x8x8xf32> to vector<8x8xf32>
    %7 = arith.truncf %6 : vector<8x8xf32> to vector<8x8xbf16>
    %c0_8 = arith.constant 0 : index
    %c0_9 = arith.constant 0 : index
    %c0_10 = arith.constant 0 : index
    %8 = vector.load %arg2[%c0_8, %c0_9, %c0_10] : memref<4x8x32xbf16, #tpu.memory_space<vmem>>, vector<1x8x32xbf16>
    %9 = vector.shape_cast %8 : vector<1x8x32xbf16> to vector<8x32xbf16>
    %cst = arith.constant dense<0.000000e+00> : vector<8x32xf32>
    %10 = tpu.matmul %7, %9, %cst {dimension_numbers = #tpu.dot_dimension_numbers<[1], [0], [0], [1], [0, 0, 1, 1], [], []>} : vector<8x8xbf16>, vector<8x32xbf16>, vector<8x32xf32> -> vector<8x32xf32>
    %11 = arith.addf %4, %10 : vector<8x32xf32>
    %c0_11 = arith.constant 0 : index
    %c1 = arith.constant 1 : index
    %c0_12 = arith.constant 0 : index
    %c0_13 = arith.constant 0 : index
    %12 = vector.load %arg1[%c0_11, %c1, %c0_12, %c0_13] : memref<1x4x8x8xf32, #tpu.memory_space<vmem>>, vector<1x1x8x8xf32>
    %13 = vector.shape_cast %12 : vector<1x1x8x8xf32> to vector<8x8xf32>
    %14 = arith.truncf %13 : vector<8x8xf32> to vector<8x8xbf16>
    %c1_14 = arith.constant 1 : index
    %c0_15 = arith.constant 0 : index
    %c0_16 = arith.constant 0 : index
    %15 = vector.load %arg2[%c1_14, %c0_15, %c0_16] : memref<4x8x32xbf16, #tpu.memory_space<vmem>>, vector<1x8x32xbf16>
    %16 = vector.shape_cast %15 : vector<1x8x32xbf16> to vector<8x32xbf16>
    %cst_17 = arith.constant dense<0.000000e+00> : vector<8x32xf32>
    %17 = tpu.matmul %14, %16, %cst_17 {dimension_numbers = #tpu.dot_dimension_numbers<[1], [0], [0], [1], [0, 0, 1, 1], [], []>} : vector<8x8xbf16>, vector<8x32xbf16>, vector<8x32xf32> -> vector<8x32xf32>
    %18 = arith.addf %11, %17 : vector<8x32xf32>
    %c0_18 = arith.constant 0 : index
    %c2 = arith.constant 2 : index
    %c0_19 = arith.constant 0 : index
    %c0_20 = arith.constant 0 : index
    %19 = vector.load %arg1[%c0_18, %c2, %c0_19, %c0_20] : memref<1x4x8x8xf32, #tpu.memory_space<vmem>>, vector<1x1x8x8xf32>
    %20 = vector.shape_cast %19 : vector<1x1x8x8xf32> to vector<8x8xf32>
    %21 = arith.truncf %20 : vector<8x8xf32> to vector<8x8xbf16>
    %c2_21 = arith.constant 2 : index
    %c0_22 = arith.constant 0 : index
    %c0_23 = arith.constant 0 : index
    %22 = vector.load %arg2[%c2_21, %c0_22, %c0_23] : memref<4x8x32xbf16, #tpu.memory_space<vmem>>, vector<1x8x32xbf16>
    %23 = vector.shape_cast %22 : vector<1x8x32xbf16> to vector<8x32xbf16>
    %cst_24 = arith.constant dense<0.000000e+00> : vector<8x32xf32>
    %24 = tpu.matmul %21, %23, %cst_24 {dimension_numbers = #tpu.dot_dimension_numbers<[1], [0], [0], [1], [0, 0, 1, 1], [], []>} : vector<8x8xbf16>, vector<8x32xbf16>, vector<8x32xf32> -> vector<8x32xf32>
    %25 = arith.addf %18, %24 : vector<8x32xf32>
    %c0_25 = arith.constant 0 : index
    %c3 = arith.constant 3 : index
    %c0_26 = arith.constant 0 : index
    %c0_27 = arith.constant 0 : index
    %26 = vector.load %arg1[%c0_25, %c3, %c0_26, %c0_27] : memref<1x4x8x8xf32, #tpu.memory_space<vmem>>, vector<1x1x8x8xf32>
    %27 = vector.shape_cast %26 : vector<1x1x8x8xf32> to vector<8x8xf32>
    %28 = arith.truncf %27 : vector<8x8xf32> to vector<8x8xbf16>
    %c3_28 = arith.constant 3 : index
    %c0_29 = arith.constant 0 : index
    %c0_30 = arith.constant 0 : index
    %29 = vector.load %arg2[%c3_28, %c0_29, %c0_30] : memref<4x8x32xbf16, #tpu.memory_space<vmem>>, vector<1x8x32xbf16>
    %30 = vector.shape_cast %29 : vector<1x8x32xbf16> to vector<8x32xbf16>
    %cst_31 = arith.constant dense<0.000000e+00> : vector<8x32xf32>
    %31 = tpu.matmul %28, %30, %cst_31 {dimension_numbers = #tpu.dot_dimension_numbers<[1], [0], [0], [1], [0, 0, 1, 1], [], []>} : vector<8x8xbf16>, vector<8x32xbf16>, vector<8x32xf32> -> vector<8x32xf32>
    %32 = arith.addf %25, %31 : vector<8x32xf32>
    %c0_32 = arith.constant 0 : index
    %c0_33 = arith.constant 0 : index
    %33 = vector.load %arg5[%c0_32, %c0_33] : memref<1x32xf32, #tpu.memory_space<vmem>>, vector<1x32xf32>
    %c0_34 = arith.constant 0 : index
    %c0_35 = arith.constant 0 : index
    %34 = vector.load %arg6[%c0_34, %c0_35] : memref<1x32xf32, #tpu.memory_space<vmem>>, vector<1x32xf32>
    %cst_36 = arith.constant dense<0.000000e+00> : vector<8xf32>
    %35 = vector.multi_reduction <add>, %32, %cst_36 [1] : vector<8x32xf32> to vector<8xf32>
    %36 = vector.shape_cast %35 : vector<8xf32> to vector<8x1xf32>
    %cst_37 = arith.constant 3.200000e+01 : f32
    %37 = vector.broadcast %cst_37 : f32 to vector<8x1xf32>
    %38 = arith.divf %36, %37 : vector<8x1xf32>
    %39 = vector.broadcast %38 : vector<8x1xf32> to vector<8x32xf32>
    %40 = arith.subf %32, %39 : vector<8x32xf32>
    %41 = arith.mulf %40, %40 : vector<8x32xf32>
    %cst_38 = arith.constant dense<0.000000e+00> : vector<8xf32>
    %42 = vector.multi_reduction <add>, %41, %cst_38 [1] : vector<8x32xf32> to vector<8xf32>
    %43 = vector.shape_cast %42 : vector<8xf32> to vector<8x1xf32>
    %cst_39 = arith.constant 3.200000e+01 : f32
    %44 = vector.broadcast %cst_39 : f32 to vector<8x1xf32>
    %45 = arith.divf %43, %44 : vector<8x1xf32>
    %cst_40 = arith.constant 9.99999996E-13 : f32
    %46 = vector.broadcast %cst_40 : f32 to vector<8x1xf32>
    %47 = arith.addf %45, %46 : vector<8x1xf32>
    %48 = math.rsqrt %47 : vector<8x1xf32>
    %49 = vector.broadcast %48 : vector<8x1xf32> to vector<8x32xf32>
    %50 = arith.mulf %40, %49 : vector<8x32xf32>
    %51 = vector.broadcast %33 : vector<1x32xf32> to vector<8x32xf32>
    %52 = arith.mulf %50, %51 : vector<8x32xf32>
    %53 = vector.broadcast %34 : vector<1x32xf32> to vector<8x32xf32>
    %54 = arith.addf %52, %53 : vector<8x32xf32>
    %c0_41 = arith.constant 0 : index
    %c0_42 = arith.constant 0 : index
    %c0_43 = arith.constant 0 : index
    %55 = vector.load %arg7[%c0_41, %c0_42, %c0_43] : memref<1x8x32xf32, #tpu.memory_space<vmem>>, vector<1x8x32xf32>
    %56 = vector.shape_cast %55 : vector<1x8x32xf32> to vector<8x32xf32>
    %57 = vector.shape_cast %54 : vector<8x32xf32> to vector<1x8x32xf32>
    tpu.vector_store %arg7[%c0_41, %c0_42, %c0_43], %57 {strides = array<i32>} : memref<1x8x32xf32, #tpu.memory_space<vmem>>, vector<1x8x32xf32>,
    return
  }
  func.func @transform_0(%arg0: i32) -> (i32, i32, i32, i32) {
    %c0_i32 = arith.constant 0 : i32
    %c0_i32_0 = arith.constant 0 : i32
    %c0_i32_1 = arith.constant 0 : i32
    %c0_i32_2 = arith.constant 0 : i32
    return %arg0, %c0_i32, %c0_i32_0, %c0_i32_1 : i32, i32, i32, i32
  }
  func.func @transform_1(%arg0: i32) -> (i32, i32, i32) {
    %c0_i32 = arith.constant 0 : i32
    %c0_i32_0 = arith.constant 0 : i32
    %c0_i32_1 = arith.constant 0 : i32
    %c0_i32_2 = arith.constant 0 : i32
    return %c0_i32, %c0_i32_0, %c0_i32_1 : i32, i32, i32
  }
  func.func @transform_2(%arg0: i32) -> (i32, i32) {
    %c0_i32 = arith.constant 0 : i32
    %c0_i32_0 = arith.constant 0 : i32
    %c0_i32_1 = arith.constant 0 : i32
    return %c0_i32, %c0_i32_0 : i32, i32
  }
  func.func @transform_3(%arg0: i32) -> (i32, i32, i32) {
    %c0_i32 = arith.constant 0 : i32
    %c0_i32_0 = arith.constant 0 : i32
    %c0_i32_1 = arith.constant 0 : i32
    return %arg0, %c0_i32, %c0_i32_0 : i32, i32, i32
  }
  func.func @transform_4(%arg0: i32) -> (i32, i32) {
    %c0_i32 = arith.constant 0 : i32
    %c0_i32_0 = arith.constant 0 : i32
    %c0_i32_1 = arith.constant 0 : i32
    return %c0_i32, %c0_i32_0 : i32, i32
  }
  func.func @transform_5(%arg0: i32) -> (i32, i32) {
    %c0_i32 = arith.constant 0 : i32
    %c0_i32_0 = arith.constant 0 : i32
    %c0_i32_1 = arith.constant 0 : i32
    return %c0_i32, %c0_i32_0 : i32, i32
  }
  func.func @transform_6(%arg0: i32) -> (i32, i32, i32) {
    %c0_i32 = arith.constant 0 : i32
    %c0_i32_0 = arith.constant 0 : i32
    %c0_i32_1 = arith.constant 0 : i32
    return %arg0, %c0_i32, %c0_i32_0 : i32, i32, i32
  }
}

module attributes {stable_mosaic.version = 11 : i64} {
  func.func @_ffn_ln_kernel(%arg0: i32, %arg1: memref<1x8x32xf32, #tpu.memory_space<vmem>>, %arg2: memref<32x64xbf16, #tpu.memory_space<vmem>>, %arg3: memref<1x64xf32, #tpu.memory_space<vmem>>, %arg4: memref<64x32xbf16, #tpu.memory_space<vmem>>, %arg5: memref<1x32xf32, #tpu.memory_space<vmem>>, %arg6: memref<1x32xf32, #tpu.memory_space<vmem>>, %arg7: memref<1x32xf32, #tpu.memory_space<vmem>>, %arg8: memref<1x8x32xf32, #tpu.memory_space<vmem>>) attributes {dimension_semantics = [#tpu.dimension_semantics<parallel>], iteration_bounds = array<i64: 2>, scalar_prefetch = 0 : i64, scratch_operands = 0 : i64, tpu.core_type = #tpu.core_type<tc>, window_params = [{transform_indices = @transform_0, window_bounds = array<i64: 1, 8, 32>}, {pipeline_mode = #tpu.pipeline_mode<synchronous>, transform_indices = @transform_1, window_bounds = array<i64: 32, 64>}, {pipeline_mode = #tpu.pipeline_mode<synchronous>, transform_indices = @transform_2, window_bounds = array<i64: 1, 64>}, {pipeline_mode = #tpu.pipeline_mode<synchronous>, transform_indices = @transform_3, window_bounds = array<i64: 64, 32>}, {pipeline_mode = #tpu.pipeline_mode<synchronous>, transform_indices = @transform_4, window_bounds = array<i64: 1, 32>}, {pipeline_mode = #tpu.pipeline_mode<synchronous>, transform_indices = @transform_5, window_bounds = array<i64: 1, 32>}, {pipeline_mode = #tpu.pipeline_mode<synchronous>, transform_indices = @transform_6, window_bounds = array<i64: 1, 32>}, {transform_indices = @transform_7, window_bounds = array<i64: 1, 8, 32>}]} {
    %c0 = arith.constant 0 : index
    %c0_0 = arith.constant 0 : index
    %c0_1 = arith.constant 0 : index
    %0 = vector.load %arg1[%c0, %c0_0, %c0_1] : memref<1x8x32xf32, #tpu.memory_space<vmem>>, vector<1x8x32xf32>
    %1 = vector.shape_cast %0 : vector<1x8x32xf32> to vector<8x32xf32>
    %2 = arith.truncf %1 : vector<8x32xf32> to vector<8x32xbf16>
    %c0_2 = arith.constant 0 : index
    %c0_3 = arith.constant 0 : index
    %3 = vector.load %arg2[%c0_2, %c0_3] : memref<32x64xbf16, #tpu.memory_space<vmem>>, vector<32x64xbf16>
    %cst = arith.constant dense<0.000000e+00> : vector<8x64xf32>
    %4 = tpu.matmul %2, %3, %cst {dimension_numbers = #tpu.dot_dimension_numbers<[1], [0], [0], [1], [0, 0, 1, 1], [], []>} : vector<8x32xbf16>, vector<32x64xbf16>, vector<8x64xf32> -> vector<8x64xf32>
    %c0_4 = arith.constant 0 : index
    %c0_5 = arith.constant 0 : index
    %5 = vector.load %arg3[%c0_4, %c0_5] : memref<1x64xf32, #tpu.memory_space<vmem>>, vector<1x64xf32>
    %6 = vector.broadcast %5 : vector<1x64xf32> to vector<8x64xf32>
    %7 = arith.addf %4, %6 : vector<8x64xf32>
    %cst_6 = arith.constant 5.000000e-01 : f32
    %8 = vector.broadcast %cst_6 : f32 to vector<8x64xf32>
    %9 = arith.mulf %8, %7 : vector<8x64xf32>
    %cst_7 = arith.constant 4.471500e-02 : f32
    %10 = vector.broadcast %cst_7 : f32 to vector<8x64xf32>
    %11 = arith.mulf %10, %7 : vector<8x64xf32>
    %12 = arith.mulf %11, %7 : vector<8x64xf32>
    %13 = arith.mulf %12, %7 : vector<8x64xf32>
    %14 = arith.addf %7, %13 : vector<8x64xf32>
    %cst_8 = arith.constant 0.797884583 : f32
    %15 = vector.broadcast %cst_8 : f32 to vector<8x64xf32>
    %16 = arith.mulf %15, %14 : vector<8x64xf32>
    %17 = math.tanh %16 : vector<8x64xf32>
    %cst_9 = arith.constant 1.000000e+00 : f32
    %18 = vector.broadcast %cst_9 : f32 to vector<8x64xf32>
    %19 = arith.addf %18, %17 : vector<8x64xf32>
    %20 = arith.mulf %9, %19 : vector<8x64xf32>
    %21 = arith.truncf %20 : vector<8x64xf32> to vector<8x64xbf16>
    %c0_10 = arith.constant 0 : index
    %c0_11 = arith.constant 0 : index
    %22 = vector.load %arg4[%c0_10, %c0_11] : memref<64x32xbf16, #tpu.memory_space<vmem>>, vector<64x32xbf16>
    %cst_12 = arith.constant dense<0.000000e+00> : vector<8x32xf32>
    %23 = tpu.matmul %21, %22, %cst_12 {dimension_numbers = #tpu.dot_dimension_numbers<[1], [0], [0], [1], [0, 0, 1, 1], [], []>} : vector<8x64xbf16>, vector<64x32xbf16>, vector<8x32xf32> -> vector<8x32xf32>
    %c0_13 = arith.constant 0 : index
    %c0_14 = arith.constant 0 : index
    %24 = vector.load %arg5[%c0_13, %c0_14] : memref<1x32xf32, #tpu.memory_space<vmem>>, vector<1x32xf32>
    %25 = vector.broadcast %24 : vector<1x32xf32> to vector<8x32xf32>
    %26 = arith.addf %23, %25 : vector<8x32xf32>
    %27 = arith.addf %26, %1 : vector<8x32xf32>
    %c0_15 = arith.constant 0 : index
    %c0_16 = arith.constant 0 : index
    %28 = vector.load %arg6[%c0_15, %c0_16] : memref<1x32xf32, #tpu.memory_space<vmem>>, vector<1x32xf32>
    %c0_17 = arith.constant 0 : index
    %c0_18 = arith.constant 0 : index
    %29 = vector.load %arg7[%c0_17, %c0_18] : memref<1x32xf32, #tpu.memory_space<vmem>>, vector<1x32xf32>
    %cst_19 = arith.constant dense<0.000000e+00> : vector<8xf32>
    %30 = vector.multi_reduction <add>, %27, %cst_19 [1] : vector<8x32xf32> to vector<8xf32>
    %31 = vector.shape_cast %30 : vector<8xf32> to vector<8x1xf32>
    %cst_20 = arith.constant 3.200000e+01 : f32
    %32 = vector.broadcast %cst_20 : f32 to vector<8x1xf32>
    %33 = arith.divf %31, %32 : vector<8x1xf32>
    %34 = vector.broadcast %33 : vector<8x1xf32> to vector<8x32xf32>
    %35 = arith.subf %27, %34 : vector<8x32xf32>
    %36 = arith.mulf %35, %35 : vector<8x32xf32>
    %cst_21 = arith.constant dense<0.000000e+00> : vector<8xf32>
    %37 = vector.multi_reduction <add>, %36, %cst_21 [1] : vector<8x32xf32> to vector<8xf32>
    %38 = vector.shape_cast %37 : vector<8xf32> to vector<8x1xf32>
    %cst_22 = arith.constant 3.200000e+01 : f32
    %39 = vector.broadcast %cst_22 : f32 to vector<8x1xf32>
    %40 = arith.divf %38, %39 : vector<8x1xf32>
    %cst_23 = arith.constant 9.99999996E-13 : f32
    %41 = vector.broadcast %cst_23 : f32 to vector<8x1xf32>
    %42 = arith.addf %40, %41 : vector<8x1xf32>
    %43 = math.rsqrt %42 : vector<8x1xf32>
    %44 = vector.broadcast %43 : vector<8x1xf32> to vector<8x32xf32>
    %45 = arith.mulf %35, %44 : vector<8x32xf32>
    %46 = vector.broadcast %28 : vector<1x32xf32> to vector<8x32xf32>
    %47 = arith.mulf %45, %46 : vector<8x32xf32>
    %48 = vector.broadcast %29 : vector<1x32xf32> to vector<8x32xf32>
    %49 = arith.addf %47, %48 : vector<8x32xf32>
    %c0_24 = arith.constant 0 : index
    %c0_25 = arith.constant 0 : index
    %c0_26 = arith.constant 0 : index
    %50 = vector.load %arg8[%c0_24, %c0_25, %c0_26] : memref<1x8x32xf32, #tpu.memory_space<vmem>>, vector<1x8x32xf32>
    %51 = vector.shape_cast %50 : vector<1x8x32xf32> to vector<8x32xf32>
    %52 = vector.shape_cast %49 : vector<8x32xf32> to vector<1x8x32xf32>
    tpu.vector_store %arg8[%c0_24, %c0_25, %c0_26], %52 {strides = array<i32>} : memref<1x8x32xf32, #tpu.memory_space<vmem>>, vector<1x8x32xf32>,
    return
  }
  func.func @transform_0(%arg0: i32) -> (i32, i32, i32) {
    %c0_i32 = arith.constant 0 : i32
    %c0_i32_0 = arith.constant 0 : i32
    %c0_i32_1 = arith.constant 0 : i32
    return %arg0, %c0_i32, %c0_i32_0 : i32, i32, i32
  }
  func.func @transform_1(%arg0: i32) -> (i32, i32) {
    %c0_i32 = arith.constant 0 : i32
    %c0_i32_0 = arith.constant 0 : i32
    %c0_i32_1 = arith.constant 0 : i32
    return %c0_i32, %c0_i32_0 : i32, i32
  }
  func.func @transform_2(%arg0: i32) -> (i32, i32) {
    %c0_i32 = arith.constant 0 : i32
    %c0_i32_0 = arith.constant 0 : i32
    %c0_i32_1 = arith.constant 0 : i32
    return %c0_i32, %c0_i32_0 : i32, i32
  }
  func.func @transform_3(%arg0: i32) -> (i32, i32) {
    %c0_i32 = arith.constant 0 : i32
    %c0_i32_0 = arith.constant 0 : i32
    %c0_i32_1 = arith.constant 0 : i32
    return %c0_i32, %c0_i32_0 : i32, i32
  }
  func.func @transform_4(%arg0: i32) -> (i32, i32) {
    %c0_i32 = arith.constant 0 : i32
    %c0_i32_0 = arith.constant 0 : i32
    %c0_i32_1 = arith.constant 0 : i32
    return %c0_i32, %c0_i32_0 : i32, i32
  }
  func.func @transform_5(%arg0: i32) -> (i32, i32) {
    %c0_i32 = arith.constant 0 : i32
    %c0_i32_0 = arith.constant 0 : i32
    %c0_i32_1 = arith.constant 0 : i32
    return %c0_i32, %c0_i32_0 : i32, i32
  }
  func.func @transform_6(%arg0: i32) -> (i32, i32) {
    %c0_i32 = arith.constant 0 : i32
    %c0_i32_0 = arith.constant 0 : i32
    %c0_i32_1 = arith.constant 0 : i32
    return %c0_i32, %c0_i32_0 : i32, i32
  }
  func.func @transform_7(%arg0: i32) -> (i32, i32, i32) {
    %c0_i32 = arith.constant 0 : i32
    %c0_i32_0 = arith.constant 0 : i32
    %c0_i32_1 = arith.constant 0 : i32
    return %arg0, %c0_i32, %c0_i32_0 : i32, i32, i32
  }
}

module attributes {stable_mosaic.version = 11 : i64} {
  func.func @_heads_kernel(%arg0: i32, %arg1: memref<1x8x32xf32, #tpu.memory_space<vmem>>, %arg2: memref<32x128xbf16, #tpu.memory_space<vmem>>, %arg3: memref<1x128xf32, #tpu.memory_space<vmem>>, %arg4: memref<1x8x128xf32, #tpu.memory_space<vmem>>) attributes {dimension_semantics = [#tpu.dimension_semantics<parallel>], iteration_bounds = array<i64: 2>, scalar_prefetch = 0 : i64, scratch_operands = 0 : i64, tpu.core_type = #tpu.core_type<tc>, window_params = [{transform_indices = @transform_0, window_bounds = array<i64: 1, 8, 32>}, {pipeline_mode = #tpu.pipeline_mode<synchronous>, transform_indices = @transform_1, window_bounds = array<i64: 32, 128>}, {pipeline_mode = #tpu.pipeline_mode<synchronous>, transform_indices = @transform_2, window_bounds = array<i64: 1, 128>}, {transform_indices = @transform_3, window_bounds = array<i64: 1, 8, 128>}]} {
    %c0 = arith.constant 0 : index
    %c0_0 = arith.constant 0 : index
    %c0_1 = arith.constant 0 : index
    %0 = vector.load %arg1[%c0, %c0_0, %c0_1] : memref<1x8x32xf32, #tpu.memory_space<vmem>>, vector<1x8x32xf32>
    %1 = vector.shape_cast %0 : vector<1x8x32xf32> to vector<8x32xf32>
    %2 = arith.truncf %1 : vector<8x32xf32> to vector<8x32xbf16>
    %c0_2 = arith.constant 0 : index
    %c0_3 = arith.constant 0 : index
    %3 = vector.load %arg2[%c0_2, %c0_3] : memref<32x128xbf16, #tpu.memory_space<vmem>>, vector<32x128xbf16>
    %cst = arith.constant dense<0.000000e+00> : vector<8x128xf32>
    %4 = tpu.matmul %2, %3, %cst {dimension_numbers = #tpu.dot_dimension_numbers<[1], [0], [0], [1], [0, 0, 1, 1], [], []>} : vector<8x32xbf16>, vector<32x128xbf16>, vector<8x128xf32> -> vector<8x128xf32>
    %c0_4 = arith.constant 0 : index
    %c0_5 = arith.constant 0 : index
    %5 = vector.load %arg3[%c0_4, %c0_5] : memref<1x128xf32, #tpu.memory_space<vmem>>, vector<1x128xf32>
    %6 = vector.broadcast %5 : vector<1x128xf32> to vector<8x128xf32>
    %7 = arith.addf %4, %6 : vector<8x128xf32>
    %c0_6 = arith.constant 0 : index
    %c0_7 = arith.constant 0 : index
    %c0_8 = arith.constant 0 : index
    %8 = vector.load %arg4[%c0_6, %c0_7, %c0_8] : memref<1x8x128xf32, #tpu.memory_space<vmem>>, vector<1x8x128xf32>
    %9 = vector.shape_cast %8 : vector<1x8x128xf32> to vector<8x128xf32>
    %10 = vector.shape_cast %7 : vector<8x128xf32> to vector<1x8x128xf32>
    tpu.vector_store %arg4[%c0_6, %c0_7, %c0_8], %10 {strides = array<i32>} : memref<1x8x128xf32, #tpu.memory_space<vmem>>, vector<1x8x128xf32>,
    return
  }
  func.func @transform_0(%arg0: i32) -> (i32, i32, i32) {
    %c0_i32 = arith.constant 0 : i32
    %c0_i32_0 = arith.constant 0 : i32
    %c0_i32_1 = arith.constant 0 : i32
    return %arg0, %c0_i32, %c0_i32_0 : i32, i32, i32
  }
  func.func @transform_1(%arg0: i32) -> (i32, i32) {
    %c0_i32 = arith.constant 0 : i32
    %c0_i32_0 = arith.constant 0 : i32
    %c0_i32_1 = arith.constant 0 : i32
    return %c0_i32, %c0_i32_0 : i32, i32
  }
  func.func @transform_2(%arg0: i32) -> (i32, i32) {
    %c0_i32 = arith.constant 0 : i32
    %c0_i32_0 = arith.constant 0 : i32
    %c0_i32_1 = arith.constant 0 : i32
    return %c0_i32, %c0_i32_0 : i32, i32
  }
  func.func @transform_3(%arg0: i32) -> (i32, i32, i32) {
    %c0_i32 = arith.constant 0 : i32
    %c0_i32_0 = arith.constant 0 : i32
    %c0_i32_1 = arith.constant 0 : i32
    return %arg0, %c0_i32, %c0_i32_0 : i32, i32, i32
  }
}

</mosaic_0001>

<bundles_post_ra>
// kernel: control_transformer_forward.11
= control target key start
LH: loop header
LB: loop body
LE: loop exit
PB: predicated region body
PF: predicated region fallthrough
CT: control target
= control target key end

     0   :  { %s641_s24 = smov 0   ;;  %s699_s0 = inlined_call_operand.vmem [shape: f32[2,8,32], index: 0, kind: input, shape index: {}]   ;;  %s700_s1 = inlined_call_operand.vmem [shape: bf16[32,64], index: 1, kind: input, shape index: {}]   ;;  %s701_s2 = inlined_call_operand.vmem [shape: f32[1,64], index: 2, kind: input, shape index: {}]   ;;  %s702_s3 = inlined_call_operand.vmem [shape: bf16[64,32], index: 3, kind: input, shape index: {}]   ;;  %s703_s4 = inlined_call_operand.vmem [shape: f32[1,32], index: 4, kind: input, shape index: {}]   ;;  %s704_s5 = inlined_call_operand.vmem [shape: f32[1,32], index: 5, kind: input, shape index: {}]   ;;  %s705_s6 = inlined_call_operand.vmem [shape: f32[1,32], index: 6, kind: input, shape index: {}]   ;;  %s706_s7 = inlined_call_operand.vmem [shape: f32[2,8,32], index: 7, kind: output, shape index: {}]  }
   0x1 LB: > { %s522_s25 = sadd.s32 4294967295, %s597_s24   ;;  %p526_p0 = scmp.ge.s32.totalorder %s597_s24, 1  ;;  %s597_s24 = sphi %s641_s24, %s17_s24  }
   0x2   : > { %p236_p1 = scmp.lt.s32.totalorder %s597_s24, 3 }
   0x4   : > { %p237_p2 = pnand %p526_p0, %p236_p1 }
   0x5   : > { %p266_p3 = scmp.lt.s32.totalorder (!%p237_p2), %s522_s25, 1 }
   0x6   : > { %240 = sbr.rel (%p237_p2) target bundleno = 751 (0x2ef), region = 48 }
   0xb   : > { %v581_v0 = vld [vmem:[%s700_s1 + $0x8] sm:$0xff]   ;;  %v599_v1 = vmov 0.0   ;;  %v582_v2 = vld [vmem:[%s700_s1] sm:$0xff]   ;;  %vm600_vm0 = vmmov 0   ;;  %s708_s25 = smov (!%p266_p3, %s522_s25), 1  ;;  %vm300_vm1 = vcmask 261120  }
   0xc   : > { %551 = vmatprep.subr.bf16.mxu0 %v599_v1  ;;  %559 = vmatprep.subr.bf16.mxu1 %v599_v1  ;;  %s527_s30 = sshll.u32 %s708_s25, 3  ;;  %v583_v5 = vld [vmem:[%s702_s3 + $0x18] sm:$0xff]   ;;  %v584_v6 = vld [vmem:[%s702_s3 + $0x10] sm:$0xff]   ;;  %v585_v7 = vld [vmem:[%s702_s3 + $0x8] sm:$0xff]   ;;  %vm393_vm2 = vcmask 523264  }
   0xd   : > { %552 = vmatpush3.bf16.msra.mxu0 %v581_v0  ;;  %555 = vmatprep.mubr.msk.bf16.mxu0 %vm600_vm0, %v599_v1  ;;  %s269_s10 = scalar_lea.vmem %s699_s0, %s527_s30  ;;  %v586_v8 = vld [vmem:[%s702_s3] sm:$0xff]   ;;  %s273_s9 = scalar_lea.vmem %s706_s7, %s527_s30 }
   0xe   : > { %553 = vmatprep.subr.bf16.mxu0 %v599_v1  ;;  %567 = vmatprep.mubr.msk.bf16.mxu1 %vm600_vm0, %v599_v1  ;;  %v275_v3 = vld [vmem:[%s269_s10] sm:$0xff] }
   0xf   : > { %v276_v4 = vpack.c.bf16 %v275_v3, %v275_v3  ;;  %560 = vmatpush3.bf16.msra.mxu1 %v583_v5  ;;  %v529_v9 = vld [vmem:[%s701_s2] ss:$0 sm:$0xff] }
  0x10   : > { %561 = vmatprep.subr.bf16.mxu1 %v599_v1  ;;  %v533_v25 = vld [vmem:[%s703_s4] ss:$0 sm:$0xff] }
  0x11   : > { %554 = vmatpush3.bf16.msra.mxu0 %v582_v2  ;;  %v539_v42 = vld [vmem:[%s704_s5] ss:$0 sm:$0xff] }
  0x12   : > { %v540_v44 = vld [vmem:[%s705_s6] ss:$0 sm:$0xff] }
  0x13   : > { %562 = vmatpush3.bf16.msra.mxu1 %v584_v6 }
  0x14   : > { %556 = vmatmul.mubr.msk.bf16.vlgmr.msra.gmra.mxu0 %vm300_vm1, %v276_v4  ;;  %563 = vmatprep.subr.bf16.mxu1 %v599_v1 }
  0x17   : > { %564 = vmatpush3.bf16.msra.mxu1 %v585_v7 }
  0x18   : > { %565 = vmatprep.subr.bf16.mxu1 %v599_v1 }
  0x1b   : > { %566 = vmatpush3.bf16.msra.mxu1 %v586_v8 }
  0xd4   : > { %v338_v10 = vpop.f32.mrf.mxu0 }
  0xd5   : > { %v339_v11 = vadd.f32 %v529_v9, %v338_v10 }
  0xd6   : > { %v557_v12 = vpop.f32.mrf.mxu0 }
  0xd7   : > { %v345_v13 = vmul.f32 0.044715, %v339_v11  ;;  %v344_v21 = vmul.f32 0.5, %v339_v11 }
  0xd8   : > { %v341_v14 = vpop.f32.mrf.mxu0 }
  0xd9   : > { %v346_v15 = vmul.f32 %v345_v13, %v339_v11 }
  0xda   : > { %v558_v16 = vpop.f32.mrf.mxu0 }
  0xdb   : > { %v347_v17 = vmul.f32 %v346_v15, %v339_v11 }
  0xdd   : > { %v348_v18 = vadd.f32 %v347_v17, %v339_v11 }
  0xdf   : > { %v349_v19 = vmul.f32 0.7978846, %v348_v18 }
  0xe1   : > { %587 = vtanh.f32 %v349_v19 }
  0xee   : > { %v588_v20 = vpop.eup %587 }
  0xef   : > { %v351_v22 = vadd.f32 1.0, %v588_v20 }
  0xf1   : > { %v352_v23 = vmul.f32 %v351_v22, %v344_v21 }
  0xf3   : > { %v353_v24 = vpack.c.bf16 %v352_v23, %v352_v23 }
  0xf5   : > { %568 = vmatmul.mubr.msk.bf16.vlgmr.msra.gmra.mxu1 %vm393_vm2, %v353_v24 }
 0x1b5   : > { %v431_v26 = vpop.f32.mrf.mxu1 }
 0x1b6   : > { %v432_v27 = vadd.f32 %v533_v25, %v431_v26 }
 0x1b7   : > { %v569_v28 = vpop.f32.mrf.mxu1 }
 0x1b8   : > { %v437_v29 = vadd.f32 %v432_v27, %v275_v3 }
 0x1b9   : > { %v434_v30 = vpop.f32.mrf.mxu1 }
 0x1ba   : > { %v440_v31 = vsel %vm300_vm1, %v437_v29, 0.0 }
 0x1bb   : > { %441 = vadd.xlane.f32.xlu0 %v440_v31  ;;  %v570_v32 = vpop.f32.mrf.mxu1 }
 0x244   : > { %v442_v33 = vpop.xlane.xlu0 %441 }
 0x245   : > { %v444_v34 = vmul.f32 0.03125, %v442_v33 }
 0x247   : > { %v445_v35 = vsub.f32 %v437_v29, %v444_v34 }
 0x249   : > { %v446_v36 = vmul.f32 %v445_v35, %v445_v35 }
 0x24b   : > { %v447_v37 = vsel %vm300_vm1, %v446_v36, 0.0 }
 0x24c   : > { %448 = vadd.xlane.f32.xlu0 %v447_v37 }
 0x2d5   : > { %v449_v38 = vpop.xlane.xlu0 %448 }
 0x2d6   : > { %v450_v39 = vmul.f32 0.03125, %v449_v38 }
 0x2d8   : > { %v451_v40 = vadd.f32 1e-12, %v450_v39 }
 0x2da   : > { %589 = vrsqrt.f32 %v451_v40 }
 0x2e7   : > { %v590_v41 = vpop.eup %589 }
 0x2e8   : > { %v453_v43 = vmul.f32 %v590_v41, %v445_v35 }
 0x2ea   : > { %v460_v45 = vmul.f32 %v539_v42, %v453_v43 }
 0x2ec   : > { %v467_v46 = vadd.f32 %v540_v44, %v460_v45 }
 0x2ee   : > { %468 = vst.msk [vmem:[%s273_s9] sm:$0xff] %vm300_vm1, %v467_v46 }
 0x2ef PF: > { %s17_s24 = sadd.s32 1, %s597_s24  }
 0x2f0   : > { %p14_p4 = scmp.ge.s32.totalorder %s17_s24, 4  }
 0x2f2   :  { %16 = sbr.rel (!%p14_p4) target bundleno = 1 (0x1), region = 78 }

// kernel: control_transformer_forward.8
= control target key start
LH: loop header
LB: loop body
LE: loop exit
PB: predicated region body
PF: predicated region fallthrough
CT: control target
= control target key end

     0   :  { %s725_s13 = smov 0   ;;  %s778_s0 = inlined_call_operand.vmem [shape: f32[2,4,8], index: 0, kind: input, shape index: {}]   ;;  %s779_s1 = inlined_call_operand.vmem [shape: f32[2,4,4], index: 1, kind: input, shape index: {}]   ;;  %s780_s2 = inlined_call_operand.vmem [shape: bf16[8,32], index: 2, kind: input, shape index: {}]   ;;  %s781_s3 = inlined_call_operand.vmem [shape: f32[1,32], index: 3, kind: input, shape index: {}]   ;;  %s782_s4 = inlined_call_operand.vmem [shape: bf16[4,32], index: 4, kind: input, shape index: {}]   ;;  %s783_s5 = inlined_call_operand.vmem [shape: f32[1,32], index: 5, kind: input, shape index: {}]   ;;  %s784_s6 = inlined_call_operand.vmem [shape: f32[4,32], index: 6, kind: input, shape index: {}]   ;;  %s785_s7 = inlined_call_operand.vmem [shape: f32[4,32], index: 7, kind: input, shape index: {}]   ;;  %s786_s8 = inlined_call_operand.vmem [shape: f32[1,32], index: 8, kind: input, shape index: {}]   ;;  %s787_s9 = inlined_call_operand.vmem [shape: f32[1,32], index: 9, kind: input, shape index: {}]   ;;  %s788_s10 = inlined_call_operand.vmem [shape: f32[2,4,64], index: 10, kind: output, shape index: {}]  }
   0x1 LB: > { %s612_s14 = sadd.s32 4294967295, %s665_s13   ;;  %p616_p0 = scmp.ge.s32.totalorder %s665_s13, 1  ;;  %s665_s13 = sphi %s725_s13, %s20_s13  }
   0x2   : > { %p320_p1 = scmp.lt.s32.totalorder %s665_s13, 3 }
   0x4   : > { %p321_p2 = pnand %p616_p0, %p320_p1 }
   0x5   : > { %p360_p3 = scmp.lt.s32.totalorder (!%p321_p2), %s612_s14, 1  ;;  %s669_s20 = smov (!%p321_p2), 32  }
   0x6   : > { %324 = sbr.rel (%p321_p2) target bundleno = 640 (0x280), region = 60 }
   0xb   : > { %v433_v0 = vld [vmem:[%s782_s4] sm:$0x3]  ;;  %vm445_vm0 = vcmask 1041408   ;;  %v667_v1 = vmov 0.0   ;;  %vm668_vm1 = vmmov 0   ;;  %vm387_vm2 = vcmask 1043456  }
   0xc   : > { %638 = vmatprep.subr.bf16.mxu1 %v667_v1  ;;  %v447_v2 = vsel %vm445_vm0, %v433_v0, 0  ;;  %640 = vmatprep.mubr.msk.bf16.mxu1 %vm668_vm1, %v667_v1  ;;  %v375_v3 = vld [vmem:[%s780_s2] sm:$0xf]  ;;  %s790_s14 = smov (!%p360_p3, %s612_s14), 1  ;;  %vm441_vm3 = vcmask 31744   ;;  %vm383_vm4 = vcmask 64512  }
   0xd   : > { %639 = vmatpush3.bf16.msra.mxu1 %v447_v2  ;;  %632 = vmatprep.subr.bf16.mxu0 %v667_v1  ;;  %v389_v4 = vsel %vm387_vm2, %v375_v3, 0  ;;  %s739_s19 = sshll.u32 %s790_s14, 2  ;;  %v622_v9 = vld [vmem:[%s783_s5] ss:$0 sm:$0xff]  ;;  %vm493_vm5 = vcmask 257024   ;;  %vm543_vm6 = vcmask 261120  }
   0xe   : > { %633 = vmatpush3.bf16.msra.mxu0 %v389_v4  ;;  %634 = vmatprep.mubr.msk.bf16.mxu0 %vm668_vm1, %v667_v1  ;;  %s367_s22 = scalar_lea.vmem %s779_s1, %s739_s19  ;;  %s363_s25 = scalar_lea.vmem %s778_s0, %s739_s19  ;;  %v620_v10 = vld [vmem:[%s781_s3] ss:$0 sm:$0xff]  ;;  %vm545_vm7 = vcmask 519168  }
   0xf   : > { %v431_v5 = vld [vmem:[%s367_s22] sm:$0xf]  ;;  %s371_s23 = scalar_lea.vmem %s788_s10, %s739_s19 }
  0x10   : > { %v373_v6 = vld [vmem:[%s363_s25] sm:$0xf]  ;;  %v432_v7 = vpack.c.bf16 %v431_v5, %v431_v5 }
  0x11   : > { %v374_v8 = vpack.c.bf16 %v373_v6, %v373_v6  ;;  %v522_v13 = vld [vmem:[%s785_s7] sm:$0xf] }
  0x12   : > { %641 = vmatmul.mubr.msk.bf16.vlgmr.msra.gmra.mxu1 %vm441_vm3, %v432_v7  ;;  %v489_v14 = vld [vmem:[%s784_s6] sm:$0xf] }
  0x13   : > { %635 = vmatmul.mubr.msk.bf16.vlgmr.msra.gmra.mxu0 %vm383_vm4, %v374_v8  ;;  %v624_v44 = vld [vmem:[%s786_s8] ss:$0 sm:$0xff] }
  0x14   : > { %v625_v46 = vld [vmem:[%s787_s9] ss:$0 sm:$0xff] }
  0xd2   : > { %v483_v11 = vpop.f32.mrf.mxu1 }
  0xd3   : > { %v425_v12 = vpop.f32.mrf.mxu0  ;;  %v484_v15 = vadd.f32 %v622_v9, %v483_v11 }
  0xd4   : > { %v426_v16 = vadd.f32 %v620_v10, %v425_v12  ;;  %v642_v17 = vpop.f32.mrf.mxu1 }
  0xd5   : > { %v636_v18 = vpop.f32.mrf.mxu0  ;;  %v523_v19 = vadd.f32 %v522_v13, %v484_v15 }
  0xd6   : > { %v490_v20 = vadd.f32 %v489_v14, %v426_v16  ;;  %v486_v21 = vpop.f32.mrf.mxu1 }
  0xd7   : > { %v428_v22 = vpop.f32.mrf.mxu0  ;;  %v524_v23 = vsel %vm493_vm5, %v523_v19, 0.0 }
  0xd8   : > { %525 = vadd.xlane.f32.xlu0 %v524_v23  ;;  %v643_v24 = vpop.f32.mrf.mxu1  ;;  %v494_v26 = vsel %vm493_vm5, %v490_v20, 0.0 }
  0xd9   : > { %v637_v25 = vpop.f32.mrf.mxu0 }
  0xdc   : > { %495 = vadd.xlane.f32.xlu0 %v494_v26 }
 0x161   : > { %v526_v27 = vpop.xlane.xlu0 %525 }
 0x162   : > { %v527_v28 = vmul.f32 0.03125, %v526_v27 }
 0x164   : > { %v528_v29 = vsub.f32 %v523_v19, %v527_v28 }
 0x165   : > { %v496_v30 = vpop.xlane.xlu0 %495 }
 0x166   : > { %v498_v31 = vmul.f32 0.03125, %v496_v30  ;;  %v529_v32 = vmul.f32 %v528_v29, %v528_v29 }
 0x168   : > { %v499_v33 = vsub.f32 %v490_v20, %v498_v31  ;;  %v530_v34 = vsel %vm493_vm5, %v529_v32, 0.0 }
 0x169   : > { %531 = vadd.xlane.f32.xlu1 %v530_v34 }
 0x16a   : > { %v500_v35 = vmul.f32 %v499_v33, %v499_v33 }
 0x16c   : > { %v501_v36 = vsel %vm493_vm5, %v500_v35, 0.0 }
 0x16d   : > { %502 = vadd.xlane.f32.xlu1 %v501_v36 }
 0x1f2   : > { %v532_v37 = vpop.xlane.xlu1 %531 }
 0x1f3   : > { %v533_v38 = vmul.f32 0.03125, %v532_v37 }
 0x1f5   : > { %v534_v39 = vadd.f32 1e-12, %v533_v38 }
 0x1f6   : > { %v503_v40 = vpop.xlane.xlu1 %502 }
 0x1f7   : > { %655 = vrsqrt.f32 %v534_v39  ;;  %v504_v41 = vmul.f32 0.03125, %v503_v40 }
 0x1f9   : > { %v505_v42 = vadd.f32 1e-12, %v504_v41 }
 0x1fb   : > { %657 = vrsqrt.f32 %v505_v42 }
 0x204   : > { %v656_v43 = vpop.eup %655 }
 0x205   : > { %v536_v45 = vmul.f32 %v656_v43, %v528_v29 }
 0x207   : > { %v537_v47 = vmul.f32 %v624_v44, %v536_v45 }
 0x208   : > { %v658_v48 = vpop.eup %657 }
 0x209   : > { %v538_v49 = vadd.f32 %v625_v46, %v537_v47  ;;  %v507_v50 = vmul.f32 %v658_v48, %v499_v33 }
 0x20b   : > { %540 = vrot.lane.b32.xlu0 %v538_v49, %s669_s20  ;;  %v514_v51 = vmul.f32 %v624_v44, %v507_v50 }
 0x20d   : > { %v521_v52 = vadd.f32 %v625_v46, %v514_v51 }
 0x27d   : > { %v541_v53 = vpop.permute.xlu0 %540 }
 0x27e   : > { %v544_v54 = vsel %vm543_vm6, %v521_v52, %v541_v53 }
 0x27f   : > { %546 = vst.msk [vmem:[%s371_s23] sm:$0xf] %vm545_vm7, %v544_v54 }
 0x280 PF: > { %s20_s13 = sadd.s32 1, %s665_s13  }
 0x281   : > { %p17_p4 = scmp.ge.s32.totalorder %s20_s13, 4  }
 0x283   :  { %19 = sbr.rel (!%p17_p4) target bundleno = 1 (0x1), region = 93 }

// kernel: control_transformer_forward.9
= control target key start
LH: loop header
LB: loop body
LE: loop exit
PB: predicated region body
PF: predicated region fallthrough
CT: control target
= control target key end

     0   :  { %s667_s12 = smov 0   ;;  %s669_s13 = smov 0   ;;  %s742_s0 = inlined_call_operand.vmem [shape: f32[2,8,32], index: 0, kind: input, shape index: {}]   ;;  %s743_s1 = inlined_call_operand.vmem [shape: bf16[4,32,24], index: 1, kind: input, shape index: {}]   ;;  %s744_s2 = inlined_call_operand.vmem [shape: f32[4,1,24], index: 2, kind: input, shape index: {}]   ;;  %s745_s3 = inlined_call_operand.vmem [shape: f32[2,4,8,8], index: 3, kind: output, shape index: {}]  }
   0x1   :  { %s671_s14 = smov 0   ;;  %s673_s15 = smov 0  }
   0x2   :  { %s675_s16 = smov 0  }
   0x3 LB: > { %s22_s17 = sadd.s32 1, %s633_s14  ;;  %s25_s18 = sadd.s32 1, %s637_s15  ;;  %s641_s16 = sphi %s675_s16, %s13_s16   ;;  %s637_s15 = sphi %s673_s15, %s749_s15   ;;  %s633_s14 = sphi %s671_s14, %s748_s14   ;;  %s629_s13 = sphi %s669_s13, %s747_s13   ;;  %s625_s12 = sphi %s667_s12, %s746_s12  }
   0x4   : > { %p23_p0 = scmp.ge.s32.totalorder %s22_s17, 4  ;;  %p511_p1 = scmp.ge.s32.totalorder %s641_s16, 1 }
   0x5   : > { %p168_p2 = scmp.lt.s32.totalorder %s641_s16, 9 }
   0x6   : > { %s751_s17 = smov (%p23_p0, %s22_s17), 0  ;;  %s753_s18 = smov (!%p23_p0, %s25_s18), %s637_s15 }
   0x7   : > { %p169_p3 = pnand %p511_p1, %p168_p2  ;;  %p27_p4 = scmp.ge.s32.totalorder %s753_s18, 2 }
   0x8   : > { %p206_p5 = scmp.lt.s32.totalorder (!%p169_p3), %s625_s12, 3  ;;  %p202_p6 = scmp.lt.s32.totalorder (!%p169_p3), %s629_s13, 1 }
   0x9   : > { %s755_s18 = smov (%p27_p4, %s753_s18), 0  ;;  %172 = sbr.rel (%p169_p3) target bundleno = 1053 (0x41d), region = 32 }
   0xa   : > { %s645_s30 = smov (!%p169_p3), 120   ;;  %s646_s4 = smov (!%p169_p3), 112  }
   0xe   : > { %v643_v0 = vmov 0.0   ;;  %vm644_vm0 = vmmov 0   ;;  %s757_s12 = smov (!%p206_p5, %s625_s12), 3  ;;  %s759_s13 = smov (!%p202_p6, %s629_s13), 1  ;;  %vm248_vm1 = vcmask 261120   ;;  %vm296_vm2 = vcmask 64512  }
   0xf   : > { %533 = vmatprep.subr.bf16.mxu0 %v643_v0  ;;  %537 = vmatprep.mubr.msk.bf16.mxu0 %vm644_vm0, %v643_v0  ;;  %s525_s19 = sshll.u32 %s757_s12, 4  ;;  %s512_s23 = sshll.u32 %s759_s13, 3  ;;  %vm361_vm3 = vcmask 1043456  }
  0x10   : > { %541 = vmatprep.subr.bf16.mxu1 %v643_v0  ;;  %543 = vmatprep.mubr.msk.bf16.mxu1 %vm644_vm0, %v643_v0  ;;  %s210_s22 = scalar_lea.vmem %s743_s1, %s525_s19  ;;  %s205_s26 = scalar_lea.vmem %s742_s0, %s512_s23 }
  0x11   : > { %v597_v1 = vld [vmem:[%s210_s22 + $0x8] sm:$0xff]   ;;  %v598_v2 = vld [vmem:[%s210_s22] sm:$0xff]   ;;  %s213_s29 = scalar_lea.vmem %s744_s2, %s757_s12  ;;  %s515_s5 = sshll.u32 %s759_s13, 2 }
  0x12   : > { %534 = vmatpush3.bf16.msra.mxu0 %v597_v1  ;;  %v223_v3 = vld [vmem:[%s205_s26] sm:$0xff]  ;;  %s219_s6 = sadd.s32 %s515_s5, %s757_s12 }
  0x13   : > { %535 = vmatprep.subr.bf16.mxu0 %v643_v0  ;;  %v224_v4 = vpack.c.bf16 %v223_v3, %v223_v3  ;;  %v517_v5 = vld [vmem:[%s213_s29] ss:$0 sm:$0xff]  ;;  %s516_s7 = sshll.u32 %s219_s6, 3 }
  0x14   : > { %s221_s10 = scalar_lea.vmem %s745_s3, %s516_s7 }
  0x16   : > { %536 = vmatpush3.bf16.msra.mxu0 %v598_v2 }
  0x17   : > { %547 = vmatprep.subr.bf16.mxu0 %v643_v0 }
  0x19   : > { %538 = vmatmul.mubr.msk.bf16.vlgmr.msra.gmra.mxu0 %vm248_vm1, %v224_v4 }
  0x1a   : > { %549 = vmatprep.mubr.msk.bf16.mxu0 %vm644_vm0, %v643_v0 }
  0xd9   : > { %v286_v6 = vpop.f32.mrf.mxu0 }
  0xda   : > { %v287_v7 = vadd.f32 %v517_v5, %v286_v6 }
  0xdb   : > { %v539_v8 = vpop.f32.mrf.mxu0 }
  0xdc   : > { %v292_v9 = vpack.c.bf16 %v287_v7, %v287_v7 }
  0xdd   : > { %v289_v10 = vpop.f32.mrf.mxu0 }
  0xde   : > { %294 = vrot.lane.b32.xlu0 %v292_v9, %s645_s30 }
  0xdf   : > { %v540_v11 = vpop.f32.mrf.mxu0 }
 0x150   : > { %v295_v12 = vpop.permute.xlu0 %294 }
 0x151   : > { %v301_v13 = vsel %vm296_vm2, %v295_v12, 0 }
 0x152   : > { %542 = vmatpush3.bf16.xpose.msra.mxu1 %v301_v13 }
 0x159   : > { %544 = vmatmul.mubr.msk.bf16.vlgmr.msra.gmra.mxu1 %vm296_vm2, %v292_v9 }
 0x219   : > { %v337_v14 = vpop.f32.mrf.mxu1 }
 0x21a   : > { %v343_v15 = vmul.f32 0.35355338, %v337_v14 }
 0x21b   : > { %v545_v16 = vpop.f32.mrf.mxu1 }
 0x21c   : > { %v344_v17 = vsel %vm296_vm2, %v343_v15, -inf }
 0x21d   : > { %345 = vmax.xlane.f32.xlu0 %v344_v17  ;;  %v340_v18 = vpop.f32.mrf.mxu1 }
 0x21f   : > { %v546_v19 = vpop.f32.mrf.mxu1 }
 0x2a6   : > { %v346_v20 = vpop.xlane.xlu0 %345 }
 0x2a7   : > { %v347_v21 = vsub.f32 %v343_v15, %v346_v20 }
 0x2a9   : > { %v348_v22 = vmul.f32 1.442695, %v347_v21 }
 0x2ab   : > { %599 = vpow2.f32 %v348_v22 }
 0x2b8   : > { %v600_v23 = vpop.eup %599 }
 0x2b9   : > { %v350_v24 = vsel %vm296_vm2, %v600_v23, 0.0 }
 0x2ba   : > { %351 = vadd.xlane.f32.xlu1 %v350_v24 }
 0x2cb   : > { %356 = vrot.lane.b32.xlu1 %v292_v9, %s646_s4 }
 0x343   : > { %v352_v25 = vpop.xlane.xlu1 %351 }
 0x344   : > { %601 = vrcp.f32 %v352_v25 }
 0x347   : > { %v357_v26 = vpop.permute.xlu1 %356 }
 0x348   : > { %v363_v27 = vsel %vm361_vm3, %v357_v26, 0 }
 0x349   : > { %548 = vmatpush3.bf16.msra.mxu0 %v363_v27 }
 0x351   : > { %v602_v28 = vpop.eup %601 }
 0x352   : > { %v354_v29 = vmul.f32 %v602_v28, %v600_v23 }
 0x354   : > { %v355_v30 = vpack.c.bf16 %v354_v29, %v354_v29 }
 0x356   : > { %550 = vmatmul.mubr.msk.bf16.vlgmr.msra.gmra.mxu0 %vm296_vm2, %v355_v30 }
 0x416   : > { %v399_v31 = vpop.f32.mrf.mxu0 }
 0x417   : > { %405 = vst.msk [vmem:[%s221_s10] sm:$0xff] %vm296_vm2, %v399_v31 }
 0x418   : > { %v551_v32 = vpop.f32.mrf.mxu0 }
 0x41a   : > { %v402_v33 = vpop.f32.mrf.mxu0 }
 0x41c   : > { %v552_v34 = vpop.f32.mrf.mxu0 }
 0x41d PF: > { %s13_s16 = sadd.s32 1, %s641_s16   ;;  %s746_s12 = smov %s633_s14 }
 0x41e   : > { %p10_p7 = scmp.ge.s32.totalorder %s13_s16, 10   ;;  %s747_s13 = smov %s637_s15 }
 0x41f   : > { %s748_s14 = smov %s751_s17  ;;  %s749_s15 = smov %s755_s18 }
 0x420   :  { %12 = sbr.rel (!%p10_p7) target bundleno = 3 (0x3), region = 68 }

// kernel: control_transformer_forward.10
= control target key start
LH: loop header
LB: loop body
LE: loop exit
PB: predicated region body
PF: predicated region fallthrough
CT: control target
= control target key end

     0   :  { %s696_s21 = smov 0   ;;  %s760_s0 = inlined_call_operand.vmem [shape: f32[2,4,8,8], index: 0, kind: input, shape index: {}]   ;;  %s761_s1 = inlined_call_operand.vmem [shape: bf16[4,8,32], index: 1, kind: input, shape index: {}]   ;;  %s762_s2 = inlined_call_operand.vmem [shape: f32[1,32], index: 2, kind: input, shape index: {}]   ;;  %s763_s3 = inlined_call_operand.vmem [shape: f32[2,8,32], index: 3, kind: input, shape index: {}]   ;;  %s764_s4 = inlined_call_operand.vmem [shape: f32[1,32], index: 4, kind: input, shape index: {}]   ;;  %s765_s5 = inlined_call_operand.vmem [shape: f32[1,32], index: 5, kind: input, shape index: {}]   ;;  %s766_s6 = inlined_call_operand.vmem [shape: f32[2,8,32], index: 6, kind: output, shape index: {}]  }
   0x1 LB: > { %s582_s22 = sadd.s32 4294967295, %s657_s21   ;;  %p586_p0 = scmp.ge.s32.totalorder %s657_s21, 1  ;;  %s657_s21 = sphi %s696_s21, %s16_s21  }
   0x2   : > { %p221_p1 = scmp.lt.s32.totalorder %s657_s21, 3 }
   0x4   : > { %p222_p2 = pnand %p586_p0, %p221_p1 }
   0x5   : > { %p254_p3 = scmp.lt.s32.totalorder (!%p222_p2), %s582_s22, 1 }
   0x6   : > { %225 = sbr.rel (%p222_p2) target bundleno = 532 (0x214), region = 44 }
   0xb   : > { %v279_v0 = vld [vmem:[%s761_s1] sm:$0xf]  ;;  %vm284_vm0 = vcmask 1043456   ;;  %v594_v1 = vld [vmem:[%s761_s1 + $0x4] sm:$0xf]  ;;  %v659_v2 = vmov 0.0  }
   0xc   : > { %615 = vmatprep.subr.bf16.mxu0 %v659_v2  ;;  %v286_v3 = vsel %vm284_vm0, %v279_v0, 0  ;;  %621 = vmatprep.subr.bf16.mxu1 %v659_v2  ;;  %v338_v4 = vsel %vm284_vm0, %v594_v1, 0  ;;  %vm660_vm1 = vmmov 0   ;;  %s768_s22 = smov (!%p254_p3, %s582_s22), 1  ;;  %v597_v5 = vld [vmem:[%s761_s1 + $0x8] sm:$0xf] }
   0xd   : > { %616 = vmatpush3.bf16.msra.mxu0 %v286_v3  ;;  %622 = vmatpush3.bf16.msra.mxu1 %v338_v4  ;;  %s606_s27 = sshll.u32 %s768_s22, 5  ;;  %v600_v6 = vld [vmem:[%s761_s1 + $0xc] sm:$0xf]  ;;  %vm280_vm2 = vcmask 64512   ;;  %v390_v11 = vsel %vm284_vm0, %v597_v5, 0  ;;  %s589_s11 = sshll.u32 %s768_s22, 3 }
   0xe   : > { %617 = vmatprep.mubr.msk.bf16.mxu0 %vm660_vm1, %v659_v2  ;;  %623 = vmatprep.mubr.msk.bf16.mxu1 %vm660_vm1, %v659_v2  ;;  %s258_s10 = scalar_lea.vmem %s760_s0, %s606_s27  ;;  %v442_v12 = vsel %vm284_vm0, %v600_v6, 0  ;;  %s262_s14 = scalar_lea.vmem %s763_s3, %s589_s11  ;;  %v591_v17 = vld [vmem:[%s762_s2] ss:$0 sm:$0xff]  ;;  %vm487_vm3 = vcmask 261120  }
   0xf   : > { %627 = vmatprep.subr.bf16.mxu0 %v659_v2  ;;  %633 = vmatprep.subr.bf16.mxu1 %v659_v2  ;;  %v277_v7 = vld [vmem:[%s258_s10] sm:$0xff]  ;;  %v593_v8 = vld [vmem:[%s258_s10 + $0x8] sm:$0xff]  ;;  %v596_v13 = vld [vmem:[%s258_s10 + $0x10] sm:$0xff]  ;;  %s266_s25 = scalar_lea.vmem %s766_s6, %s589_s11 }
  0x10   : > { %v278_v9 = vpack.c.bf16 %v277_v7, %v277_v7  ;;  %v331_v10 = vpack.c.bf16 %v593_v8, %v593_v8  ;;  %v599_v14 = vld [vmem:[%s258_s10 + $0x18] sm:$0xff]  ;;  %v383_v15 = vpack.c.bf16 %v596_v13, %v596_v13  ;;  %v269_v18 = vld [vmem:[%s262_s14] sm:$0xff] }
  0x11   : > { %v435_v16 = vpack.c.bf16 %v599_v14, %v599_v14  ;;  %v276_v19 = vadd.f32 %v591_v17, %v269_v18  ;;  %v602_v50 = vld [vmem:[%s764_s4] ss:$0 sm:$0xff] }
  0x12   : > { %618 = vmatmul.mubr.msk.bf16.vlgmr.msra.gmra.mxu0 %vm280_vm2, %v278_v9  ;;  %624 = vmatmul.mubr.msk.bf16.vlgmr.msra.gmra.mxu1 %vm280_vm2, %v331_v10  ;;  %v603_v52 = vld [vmem:[%s765_s5] ss:$0 sm:$0xff] }
  0x13   : > { %628 = vmatpush3.bf16.msra.mxu0 %v390_v11  ;;  %634 = vmatpush3.bf16.msra.mxu1 %v442_v12 }
  0x14   : > { %629 = vmatprep.mubr.msk.bf16.mxu0 %vm660_vm1, %v659_v2  ;;  %635 = vmatprep.mubr.msk.bf16.mxu1 %vm660_vm1, %v659_v2 }
  0x1a   : > { %630 = vmatmul.mubr.msk.bf16.vlgmr.msra.gmra.mxu0 %vm280_vm2, %v383_v15  ;;  %636 = vmatmul.mubr.msk.bf16.vlgmr.msra.gmra.mxu1 %vm280_vm2, %v435_v16 }
  0xd2   : > { %v322_v20 = vpop.f32.mrf.mxu0  ;;  %v374_v21 = vpop.f32.mrf.mxu1 }
  0xd3   : > { %v328_v24 = vadd.f32 %v322_v20, %v276_v19 }
  0xd4   : > { %v619_v22 = vpop.f32.mrf.mxu0  ;;  %v625_v23 = vpop.f32.mrf.mxu1 }
  0xd5   : > { %v380_v29 = vadd.f32 %v374_v21, %v328_v24 }
  0xd6   : > { %v325_v25 = vpop.f32.mrf.mxu0  ;;  %v377_v26 = vpop.f32.mrf.mxu1 }
  0xd8   : > { %v620_v27 = vpop.f32.mrf.mxu0  ;;  %v626_v28 = vpop.f32.mrf.mxu1 }
  0xda   : > { %v426_v30 = vpop.f32.mrf.mxu0  ;;  %v478_v31 = vpop.f32.mrf.mxu1 }
  0xdb   : > { %v432_v32 = vadd.f32 %v426_v30, %v380_v29 }
  0xdc   : > { %v631_v33 = vpop.f32.mrf.mxu0  ;;  %v637_v34 = vpop.f32.mrf.mxu1 }
  0xdd   : > { %v484_v35 = vadd.f32 %v478_v31, %v432_v32 }
  0xde   : > { %v429_v36 = vpop.f32.mrf.mxu0  ;;  %v481_v37 = vpop.f32.mrf.mxu1 }
  0xdf   : > { %v488_v38 = vsel %vm487_vm3, %v484_v35, 0.0 }
  0xe0   : > { %v638_v39 = vpop.f32.mrf.mxu1  ;;  %489 = vadd.xlane.f32.xlu0 %v488_v38  ;;  %v632_v40 = vpop.f32.mrf.mxu0 }
 0x169   : > { %v490_v41 = vpop.xlane.xlu0 %489 }
 0x16a   : > { %v492_v42 = vmul.f32 0.03125, %v490_v41 }
 0x16c   : > { %v493_v43 = vsub.f32 %v484_v35, %v492_v42 }
 0x16e   : > { %v494_v44 = vmul.f32 %v493_v43, %v493_v43 }
 0x170   : > { %v495_v45 = vsel %vm487_vm3, %v494_v44, 0.0 }
 0x171   : > { %496 = vadd.xlane.f32.xlu0 %v495_v45 }
 0x1fa   : > { %v497_v46 = vpop.xlane.xlu0 %496 }
 0x1fb   : > { %v498_v47 = vmul.f32 0.03125, %v497_v46 }
 0x1fd   : > { %v499_v48 = vadd.f32 1e-12, %v498_v47 }
 0x1ff   : > { %649 = vrsqrt.f32 %v499_v48 }
 0x20c   : > { %v650_v49 = vpop.eup %649 }
 0x20d   : > { %v501_v51 = vmul.f32 %v650_v49, %v493_v43 }
 0x20f   : > { %v508_v53 = vmul.f32 %v602_v50, %v501_v51 }
 0x211   : > { %v515_v54 = vadd.f32 %v603_v52, %v508_v53 }
 0x213   : > { %516 = vst.msk [vmem:[%s266_s25] sm:$0xff] %vm487_vm3, %v515_v54 }
 0x214 PF: > { %s16_s21 = sadd.s32 1, %s657_s21  }
 0x215   : > { %p13_p4 = scmp.ge.s32.totalorder %s16_s21, 4  }
 0x217   :  { %15 = sbr.rel (!%p13_p4) target bundleno = 1 (0x1), region = 83 }

// kernel: control_transformer_forward.15
= control target key start
LH: loop header
LB: loop body
LE: loop exit
PB: predicated region body
PF: predicated region fallthrough
CT: control target
= control target key end

     0   :  { %s356_s12 = smov 0   ;;  %s382_s0 = inlined_call_operand.vmem [shape: f32[2,8,32], index: 0, kind: input, shape index: {}]   ;;  %s383_s1 = inlined_call_operand.vmem [shape: bf16[32,128], index: 1, kind: input, shape index: {}]   ;;  %s384_s2 = inlined_call_operand.vmem [shape: f32[1,128], index: 2, kind: input, shape index: {}]   ;;  %s385_s3 = inlined_call_operand.vmem [shape: f32[2,8,128], index: 3, kind: output, shape index: {}]  }
   0x1 LB: > { %s290_s13 = sadd.s32 4294967295, %s332_s12   ;;  %p294_p0 = scmp.ge.s32.totalorder %s332_s12, 1  ;;  %s332_s12 = sphi %s356_s12, %s13_s12  }
   0x2   : > { %p136_p1 = scmp.lt.s32.totalorder %s332_s12, 3 }
   0x4   : > { %p137_p2 = pnand %p294_p0, %p136_p1 }
   0x5   : > { %p158_p3 = scmp.lt.s32.totalorder (!%p137_p2), %s290_s13, 1 }
   0x6   : > { %140 = sbr.rel (%p137_p2) target bundleno = 219 (0xdb), region = 32 }
   0xb   : > { %v324_v0 = vld [vmem:[%s383_s1 + $0x8] sm:$0xff]   ;;  %v334_v1 = vmov 0.0   ;;  %v325_v2 = vld [vmem:[%s383_s1] sm:$0xff]   ;;  %vm335_vm0 = vmmov 0   ;;  %s387_s13 = smov (!%p158_p3, %s290_s13), 1  ;;  %vm192_vm1 = vcmask 261120  }
   0xc   : > { %306 = vmatprep.subr.bf16.mxu0 %v334_v1  ;;  %310 = vmatprep.mubr.msk.bf16.mxu0 %vm335_vm0, %v334_v1  ;;  %s295_s18 = sshll.u32 %s387_s13, 3  ;;  %v297_v5 = vld [vmem:[%s384_s2] ss:$0 sm:$0xff] }
   0xd   : > { %307 = vmatpush3.bf16.msra.mxu0 %v324_v0  ;;  %s161_s21 = scalar_lea.vmem %s382_s0, %s295_s18  ;;  %s165_s26 = scalar_lea.vmem %s385_s3, %s295_s18 }
   0xe   : > { %308 = vmatprep.subr.bf16.mxu0 %v334_v1  ;;  %v167_v3 = vld [vmem:[%s161_s21] sm:$0xff] }
   0xf   : > { %v168_v4 = vpack.c.bf16 %v167_v3, %v167_v3 }
  0x11   : > { %309 = vmatpush3.bf16.msra.mxu0 %v325_v2 }
  0x14   : > { %311 = vmatmul.mubr.msk.bf16.vlgmr.msra.gmra.mxu0 %vm192_vm1, %v168_v4 }
  0xd4   : > { %v230_v6 = vpop.f32.mrf.mxu0 }
  0xd5   : > { %v231_v7 = vadd.f32 %v297_v5, %v230_v6 }
  0xd6   : > { %v312_v8 = vpop.f32.mrf.mxu0 }
  0xd7   : > { %236 = vst [vmem:[%s165_s26] sm:$0xff] %v231_v7 }
  0xd8   : > { %v233_v9 = vpop.f32.mrf.mxu0 }
  0xda   : > { %v313_v10 = vpop.f32.mrf.mxu0 }
  0xdb PF: > { %s13_s12 = sadd.s32 1, %s332_s12  }
  0xdc   : > { %p10_p4 = scmp.ge.s32.totalorder %s13_s12, 4  }
  0xde   :  { %12 = sbr.rel (!%p10_p4) target bundleno = 1 (0x1), region = 62 }

</bundles_post_ra>
